<compile_context>
chip_gen: v6e
topology: v6e:2x2x1
jax: 0.10.0
libtpu: 0.0.40
codegen_flags: <defaults>
</compile_context>

<pallas_src>
import functools

import numpy as np
import jax
import jax.numpy as jnp
from jax.experimental import pallas as pl
from jax.experimental.pallas import tpu as pltpu

ALPHA = 0.2      # LeakyReLU negative slope used by GATLayer
NEG_BIG = -1e30  # finite mask value (f32 softmax math)


def _gat_fused_kernel(h_all_ref, h_tile_ref, w_ref, a_ref, adj_ref, out_ref,
                      *, num_heads, f_out, alpha):
    """All heads, one dst-node tile per grid step.

    h_all_ref  : (N, Fin)        node features of ALL (source) nodes, resident
    h_tile_ref : (TILE_N, Fin)   node features of this destination tile
    w_ref      : (Fin, H*Fout)   fused, pre-transposed fc weights (all heads)
    a_ref      : (H*Fout, 2H)    block-diag attn weights; [:, :H]=src, [:, H:]=dst
    adj_ref    : (TILE_N, N) i8  adj[dst, src] != 0 iff edge src -> dst
    out_ref    : (TILE_N, H*Fout) 'cat' output for this destination tile
    """
    H, Fout = num_heads, f_out

    # Fused per-head linear projection: one wide MXU matmul for all heads.
    z_all = jnp.dot(h_all_ref[...], w_ref[...],
                    preferred_element_type=jnp.float32)          # (N, H*Fout)
    z_tile = jnp.dot(h_tile_ref[...], w_ref[...],
                     preferred_element_type=jnp.float32)         # (TILE_N, H*Fout)

    # Fused attention projections for all heads (block-diagonal attn weights).
    a_all = a_ref[...]                                           # (H*Fout, 2H)
    e_src = jnp.dot(z_all, a_all[:, :H],
                    preferred_element_type=jnp.float32)          # (N, H)
    e_dst = jnp.dot(z_tile, a_all[:, H:],
                    preferred_element_type=jnp.float32)          # (TILE_N, H)
    # One cross-lane relayout for all heads (instead of one transpose per head).
    e_src_t = jnp.transpose(e_src, (1, 0))                       # (H, N)

    edge_mask = adj_ref[...] != 0                                # (TILE_N, N) bool

    head_outs = []
    for hd in range(H):  # short, unrolled at trace time
        # logits[dst, src] = leaky_relu(a_dst . z[dst] + a_src . z[src])
        logits = e_dst[:, hd:hd + 1] + e_src_t[hd:hd + 1, :]     # (TILE_N, N)
        logits = jnp.where(logits > 0, logits, alpha * logits)   # LeakyReLU(0.2)

        # Masked softmax over incoming edges (the "mailbox" dimension).
        masked = jnp.where(edge_mask, logits, NEG_BIG)
        m = jnp.max(masked, axis=-1, keepdims=True)
        p = jnp.where(edge_mask, jnp.exp(masked - m), 0.0)
        denom = jnp.sum(p, axis=-1, keepdims=True)
        inv = jnp.where(denom > 0.0, pl.reciprocal(denom, approx=True), 0.0)
        attn = p * inv                                           # (TILE_N, N)

        # h_dst = sum_src attn[dst, src] * z[src]
        z_head = z_all[:, hd * Fout:(hd + 1) * Fout]             # (N, Fout) static slice
        head_outs.append(jnp.dot(attn, z_head,
                                 preferred_element_type=jnp.float32))

    # Single lane-dense (TILE_N, H*Fout) store in 'cat' layout.
    out_ref[...] = jnp.concatenate(head_outs, axis=-1).astype(out_ref.dtype)


def multi_head_gat(h, adj, w, a, merge="cat", tile_n=None):
    """h: (N, Fin) f32; adj: (N, N) any dtype (nonzero == edge src->dst at
    adj[dst, src]); w: (H, Fout, Fin) per-head nn.Linear weights;
    a: (H, Fout, 2) attn_fc weights split into src ([...,0]) / dst ([...,1]) parts.
    """
    H, Fout, Fin = w.shape
    N = h.shape[0]
    HF = H * Fout

    if tile_n is None:
        # Biggest tile that comfortably fits VMEM; 256 rows x N adj + logits
        # intermediates stay well under the 32 MiB scoped default even on v7x.
        tile_n = min(N, 256)
    assert N % tile_n == 0, (N, tile_n)

    # Pre-transposed, head-fused fc weight: (Fin, H*Fout); z_all = h @ w_all.
    w_all = jnp.transpose(w, (2, 0, 1)).reshape(Fin, HF).astype(jnp.float32)

    # Block-diagonal fused attention weights: (H*Fout, 2H).
    eye = jnp.eye(H, dtype=jnp.float32)
    a_src_blk = (a[:, :, 0].astype(jnp.float32)[:, :, None] * eye[:, None, :]).reshape(HF, H)
    a_dst_blk = (a[:, :, 1].astype(jnp.float32)[:, :, None] * eye[:, None, :]).reshape(HF, H)
    a_all = jnp.concatenate([a_src_blk, a_dst_blk], axis=1)      # (HF, 2H)

    # Adjacency as an int8 mask (4x less HBM/VMEM than f32 for the O(N^2) input).
    adj_i8 = (adj != 0).astype(jnp.int8)
    h = h.astype(jnp.float32)

    kernel = functools.partial(_gat_fused_kernel,
                               num_heads=H, f_out=Fout, alpha=ALPHA)

    out = pl.pallas_call(
        kernel,
        out_shape=jax.ShapeDtypeStruct((N, HF), jnp.float32),
        grid_spec=pltpu.PrefetchScalarGridSpec(
            num_scalar_prefetch=0,
            grid=(N // tile_n,),
            in_specs=[
                pl.BlockSpec((N, Fin), lambda i: (0, 0)),        # h (all src), resident
                pl.BlockSpec((tile_n, Fin), lambda i: (i, 0)),   # h rows of this dst tile
                pl.BlockSpec((Fin, HF), lambda i: (0, 0)),       # fused fc weight, resident
                pl.BlockSpec((HF, 2 * H), lambda i: (0, 0)),     # fused attn weight, resident
                pl.BlockSpec((tile_n, N), lambda i: (i, 0)),     # adjacency rows (dst tile)
            ],
            out_specs=pl.BlockSpec((tile_n, HF), lambda i: (i, 0)),
        ),
        compiler_params=pltpu.CompilerParams(
            dimension_semantics=("parallel",)),                  # shards tiles on v7x's 2 TCs
    )(h, h, w_all, a_all, adj_i8)

    if merge == "cat":
        # Kernel already writes torch.cat(head_outs, dim=1) layout: (N, H*Fout).
        return out
    # merge == 'mean': torch.mean(torch.stack(head_outs, dim=1), dim=1)
    return jnp.mean(out.reshape(N, H, Fout), axis=1)


def _reference(h, adj, w, a, merge="cat"):
    """Pure-JAX reference of the same dense-graph GAT forward (f32)."""
    outs = []
    mask = adj != 0
    for hd in range(w.shape[0]):
        z = h @ w[hd].T
        e_src = z @ a[hd, :, 0]
        e_dst = z @ a[hd, :, 1]
        logits = e_dst[:, None] + e_src[None, :]
        logits = jnp.where(logits > 0, logits, ALPHA * logits)
        masked = jnp.where(mask, logits, -jnp.inf)
        attn = jax.nn.softmax(masked, axis=-1)
        outs.append(attn @ z)
    stacked = jnp.stack(outs, axis=0)  # (H, N, Fout)
    if merge == "cat":
        return jnp.transpose(stacked, (1, 0, 2)).reshape(h.shape[0], -1)
    return jnp.mean(stacked, axis=0)


if __name__ == "__main__":
    # Small deterministic problem: N nodes, Fin -> Fout per head, H heads.
    # N=64 with tile_n=32 gives a 2-step "parallel" grid (exercises dst tiling).
    N, FIN, FOUT, HEADS = 64, 16, 32, 4
    TILE_N = 32

    key = jax.random.PRNGKey(0)
    k_h, k_w, k_a, k_adj = jax.random.split(key, 4)

    h = jax.random.normal(k_h, (N, FIN), dtype=jnp.float32)

    # Deterministic parameter init (synthetic, not a checkpoint load).
    w = jax.random.normal(k_w, (HEADS, FOUT, FIN), dtype=jnp.float32) * (1.0 / np.sqrt(FIN))
    a = jax.random.normal(k_a, (HEADS, FOUT, 2), dtype=jnp.float32) * (1.0 / np.sqrt(2 * FOUT))

    # Random directed graph + self loops (every node has >=1 incoming edge,
    # matching DGL where reduce only fires for nodes with mail).
    rand = jax.random.uniform(k_adj, (N, N))
    adj = jnp.where((rand > 0.6) | (jnp.eye(N) > 0), 1, 0).astype(jnp.int8)

    out_cat = multi_head_gat(h, adj, w, a, merge="cat", tile_n=TILE_N)
    out_cat = jax.block_until_ready(out_cat)
    assert out_cat.shape == (N, HEADS * FOUT), out_cat.shape

    ref_cat = _reference(h, adj, w, a, merge="cat")
    np.testing.assert_allclose(np.asarray(out_cat), np.asarray(ref_cat),
                               rtol=1e-2, atol=1e-2)

    out_mean = multi_head_gat(h, adj, w, a, merge="mean", tile_n=TILE_N)
    out_mean = jax.block_until_ready(out_mean)
    ref_mean = _reference(h, adj, w, a, merge="mean")
    np.testing.assert_allclose(np.asarray(out_mean), np.asarray(ref_mean),
                               rtol=1e-2, atol=1e-2)

    print("KERNEL_OK")
</pallas_src>

<mosaic_0001>
module attributes {stable_mosaic.version = 11 : i64} {
  func.func @_gat_fused_kernel(%arg0: i32, %arg1: memref<64x16xf32, #tpu.memory_space<vmem>>, %arg2: memref<32x16xf32, #tpu.memory_space<vmem>>, %arg3: memref<16x128xf32, #tpu.memory_space<vmem>>, %arg4: memref<128x8xf32, #tpu.memory_space<vmem>>, %arg5: memref<32x64xi8, #tpu.memory_space<vmem>>, %arg6: memref<32x128xf32, #tpu.memory_space<vmem>>) attributes {dimension_semantics = [#tpu.dimension_semantics<parallel>], iteration_bounds = array<i64: 2>, scalar_prefetch = 0 : i64, scratch_operands = 0 : i64, tpu.core_type = #tpu.core_type<tc>, window_params = [{pipeline_mode = #tpu.pipeline_mode<synchronous>, transform_indices = @transform_0, window_bounds = array<i64: 64, 16>}, {transform_indices = @transform_1, window_bounds = array<i64: 32, 16>}, {pipeline_mode = #tpu.pipeline_mode<synchronous>, transform_indices = @transform_2, window_bounds = array<i64: 16, 128>}, {pipeline_mode = #tpu.pipeline_mode<synchronous>, transform_indices = @transform_3, window_bounds = array<i64: 128, 8>}, {transform_indices = @transform_4, window_bounds = array<i64: 32, 64>}, {transform_indices = @transform_5, window_bounds = array<i64: 32, 128>}]} {
    %c0 = arith.constant 0 : index
    %c0_0 = arith.constant 0 : index
    %0 = vector.load %arg1[%c0, %c0_0] : memref<64x16xf32, #tpu.memory_space<vmem>>, vector<64x16xf32>
    %c0_1 = arith.constant 0 : index
    %c0_2 = arith.constant 0 : index
    %1 = vector.load %arg3[%c0_1, %c0_2] : memref<16x128xf32, #tpu.memory_space<vmem>>, vector<16x128xf32>
    %cst = arith.constant dense<0.000000e+00> : vector<64x128xf32>
    %2 = tpu.matmul %0, %1, %cst {dimension_numbers = #tpu.dot_dimension_numbers<[1], [0], [0], [1], [0, 0, 1, 1], [], []>} : vector<64x16xf32>, vector<16x128xf32>, vector<64x128xf32> -> vector<64x128xf32>
    %c0_3 = arith.constant 0 : index
    %c0_4 = arith.constant 0 : index
    %3 = vector.load %arg2[%c0_3, %c0_4] : memref<32x16xf32, #tpu.memory_space<vmem>>, vector<32x16xf32>
    %c0_5 = arith.constant 0 : index
    %c0_6 = arith.constant 0 : index
    %4 = vector.load %arg3[%c0_5, %c0_6] : memref<16x128xf32, #tpu.memory_space<vmem>>, vector<16x128xf32>
    %cst_7 = arith.constant dense<0.000000e+00> : vector<32x128xf32>
    %5 = tpu.matmul %3, %4, %cst_7 {dimension_numbers = #tpu.dot_dimension_numbers<[1], [0], [0], [1], [0, 0, 1, 1], [], []>} : vector<32x16xf32>, vector<16x128xf32>, vector<32x128xf32> -> vector<32x128xf32>
    %c0_8 = arith.constant 0 : index
    %c0_9 = arith.constant 0 : index
    %6 = vector.load %arg4[%c0_8, %c0_9] : memref<128x8xf32, #tpu.memory_space<vmem>>, vector<128x8xf32>
    %7 = vector.extract_strided_slice %6 {offsets = [0, 0], sizes = [128, 4], strides = [1, 1]} : vector<128x8xf32> to vector<128x4xf32>
    %cst_10 = arith.constant dense<0.000000e+00> : vector<64x4xf32>
    %8 = tpu.matmul %2, %7, %cst_10 {dimension_numbers = #tpu.dot_dimension_numbers<[1], [0], [0], [1], [0, 0, 1, 1], [], []>} : vector<64x128xf32>, vector<128x4xf32>, vector<64x4xf32> -> vector<64x4xf32>
    %9 = vector.extract_strided_slice %6 {offsets = [0, 4], sizes = [128, 4], strides = [1, 1]} : vector<128x8xf32> to vector<128x4xf32>
    %cst_11 = arith.constant dense<0.000000e+00> : vector<32x4xf32>
    %10 = tpu.matmul %5, %9, %cst_11 {dimension_numbers = #tpu.dot_dimension_numbers<[1], [0], [0], [1], [0, 0, 1, 1], [], []>} : vector<32x128xf32>, vector<128x4xf32>, vector<32x4xf32> -> vector<32x4xf32>
    %11 = tpu.transpose %8, [1, 0] : vector<64x4xf32> -> vector<4x64xf32>
    %c0_12 = arith.constant 0 : index
    %c0_13 = arith.constant 0 : index
    %12 = vector.load %arg5[%c0_12, %c0_13] : memref<32x64xi8, #tpu.memory_space<vmem>>, vector<32x64xi8>
    %c0_i8 = arith.constant 0 : i8
    %13 = vector.broadcast %c0_i8 : i8 to vector<32x64xi8>
    %14 = arith.cmpi ne, %12, %13 : vector<32x64xi8>
    %15 = vector.extract_strided_slice %10 {offsets = [0, 0], sizes = [32, 1], strides = [1, 1]} : vector<32x4xf32> to vector<32x1xf32>
    %16 = vector.extract_strided_slice %11 {offsets = [0, 0], sizes = [1, 64], strides = [1, 1]} : vector<4x64xf32> to vector<1x64xf32>
    %17 = vector.broadcast %15 : vector<32x1xf32> to vector<32x64xf32>
    %18 = vector.broadcast %16 : vector<1x64xf32> to vector<32x64xf32>
    %19 = arith.addf %17, %18 : vector<32x64xf32>
    %cst_14 = arith.constant 0.000000e+00 : f32
    %20 = vector.broadcast %cst_14 : f32 to vector<32x64xf32>
    %21 = arith.cmpf ogt, %19, %20 : vector<32x64xf32>
    %cst_15 = arith.constant 2.000000e-01 : f32
    %22 = vector.broadcast %cst_15 : f32 to vector<32x64xf32>
    %23 = arith.mulf %22, %19 : vector<32x64xf32>
    %24 = arith.select %21, %19, %23 : vector<32x64xi1>, vector<32x64xf32>
    %cst_16 = arith.constant -1.000000e+30 : f32
    %25 = vector.broadcast %cst_16 : f32 to vector<32x64xf32>
    %26 = arith.select %14, %24, %25 : vector<32x64xi1>, vector<32x64xf32>
    %cst_17 = arith.constant dense<0xFF800000> : vector<32xf32>
    %27 = vector.multi_reduction <maximumf>, %26, %cst_17 [1] : vector<32x64xf32> to vector<32xf32>
    %28 = vector.shape_cast %27 : vector<32xf32> to vector<32x1xf32>
    %29 = vector.broadcast %28 : vector<32x1xf32> to vector<32x64xf32>
    %30 = arith.subf %26, %29 : vector<32x64xf32>
    %31 = math.exp %30 : vector<32x64xf32>
    %cst_18 = arith.constant 0.000000e+00 : f32
    %32 = vector.broadcast %cst_18 : f32 to vector<32x64xf32>
    %33 = arith.select %14, %31, %32 : vector<32x64xi1>, vector<32x64xf32>
    %cst_19 = arith.constant dense<0.000000e+00> : vector<32xf32>
    %34 = vector.multi_reduction <add>, %33, %cst_19 [1] : vector<32x64xf32> to vector<32xf32>
    %35 = vector.shape_cast %34 : vector<32xf32> to vector<32x1xf32>
    %cst_20 = arith.constant 0.000000e+00 : f32
    %36 = vector.broadcast %cst_20 : f32 to vector<32x1xf32>
    %37 = arith.cmpf ogt, %35, %36 : vector<32x1xf32>
    %38 = tpu.reciprocal %35 {approx = true} : vector<32x1xf32> -> vector<32x1xf32>
    %cst_21 = arith.constant 0.000000e+00 : f32
    %39 = vector.broadcast %cst_21 : f32 to vector<32x1xf32>
    %40 = arith.select %37, %38, %39 : vector<32x1xi1>, vector<32x1xf32>
    %41 = vector.broadcast %40 : vector<32x1xf32> to vector<32x64xf32>
    %42 = arith.mulf %33, %41 : vector<32x64xf32>
    %43 = vector.extract_strided_slice %2 {offsets = [0, 0], sizes = [64, 32], strides = [1, 1]} : vector<64x128xf32> to vector<64x32xf32>
    %cst_22 = arith.constant dense<0.000000e+00> : vector<32x32xf32>
    %44 = tpu.matmul %42, %43, %cst_22 {dimension_numbers = #tpu.dot_dimension_numbers<[1], [0], [0], [1], [0, 0, 1, 1], [], []>} : vector<32x64xf32>, vector<64x32xf32>, vector<32x32xf32> -> vector<32x32xf32>
    %45 = vector.extract_strided_slice %10 {offsets = [0, 1], sizes = [32, 1], strides = [1, 1]} : vector<32x4xf32> to vector<32x1xf32>
    %46 = vector.extract_strided_slice %11 {offsets = [1, 0], sizes = [1, 64], strides = [1, 1]} : vector<4x64xf32> to vector<1x64xf32>
    %47 = vector.broadcast %45 : vector<32x1xf32> to vector<32x64xf32>
    %48 = vector.broadcast %46 : vector<1x64xf32> to vector<32x64xf32>
    %49 = arith.addf %47, %48 : vector<32x64xf32>
    %cst_23 = arith.constant 0.000000e+00 : f32
    %50 = vector.broadcast %cst_23 : f32 to vector<32x64xf32>
    %51 = arith.cmpf ogt, %49, %50 : vector<32x64xf32>
    %cst_24 = arith.constant 2.000000e-01 : f32
    %52 = vector.broadcast %cst_24 : f32 to vector<32x64xf32>
    %53 = arith.mulf %52, %49 : vector<32x64xf32>
    %54 = arith.select %51, %49, %53 : vector<32x64xi1>, vector<32x64xf32>
    %cst_25 = arith.constant -1.000000e+30 : f32
    %55 = vector.broadcast %cst_25 : f32 to vector<32x64xf32>
    %56 = arith.select %14, %54, %55 : vector<32x64xi1>, vector<32x64xf32>
    %cst_26 = arith.constant dense<0xFF800000> : vector<32xf32>
    %57 = vector.multi_reduction <maximumf>, %56, %cst_26 [1] : vector<32x64xf32> to vector<32xf32>
    %58 = vector.shape_cast %57 : vector<32xf32> to vector<32x1xf32>
    %59 = vector.broadcast %58 : vector<32x1xf32> to vector<32x64xf32>
    %60 = arith.subf %56, %59 : vector<32x64xf32>
    %61 = math.exp %60 : vector<32x64xf32>
    %cst_27 = arith.constant 0.000000e+00 : f32
    %62 = vector.broadcast %cst_27 : f32 to vector<32x64xf32>
    %63 = arith.select %14, %61, %62 : vector<32x64xi1>, vector<32x64xf32>
    %cst_28 = arith.constant dense<0.000000e+00> : vector<32xf32>
    %64 = vector.multi_reduction <add>, %63, %cst_28 [1] : vector<32x64xf32> to vector<32xf32>
    %65 = vector.shape_cast %64 : vector<32xf32> to vector<32x1xf32>
    %cst_29 = arith.constant 0.000000e+00 : f32
    %66 = vector.broadcast %cst_29 : f32 to vector<32x1xf32>
    %67 = arith.cmpf ogt, %65, %66 : vector<32x1xf32>
    %68 = tpu.reciprocal %65 {approx = true} : vector<32x1xf32> -> vector<32x1xf32>
    %cst_30 = arith.constant 0.000000e+00 : f32
    %69 = vector.broadcast %cst_30 : f32 to vector<32x1xf32>
    %70 = arith.select %67, %68, %69 : vector<32x1xi1>, vector<32x1xf32>
    %71 = vector.broadcast %70 : vector<32x1xf32> to vector<32x64xf32>
    %72 = arith.mulf %63, %71 : vector<32x64xf32>
    %73 = vector.extract_strided_slice %2 {offsets = [0, 32], sizes = [64, 32], strides = [1, 1]} : vector<64x128xf32> to vector<64x32xf32>
    %cst_31 = arith.constant dense<0.000000e+00> : vector<32x32xf32>
    %74 = tpu.matmul %72, %73, %cst_31 {dimension_numbers = #tpu.dot_dimension_numbers<[1], [0], [0], [1], [0, 0, 1, 1], [], []>} : vector<32x64xf32>, vector<64x32xf32>, vector<32x32xf32> -> vector<32x32xf32>
    %75 = vector.extract_strided_slice %10 {offsets = [0, 2], sizes = [32, 1], strides = [1, 1]} : vector<32x4xf32> to vector<32x1xf32>
    %76 = vector.extract_strided_slice %11 {offsets = [2, 0], sizes = [1, 64], strides = [1, 1]} : vector<4x64xf32> to vector<1x64xf32>
    %77 = vector.broadcast %75 : vector<32x1xf32> to vector<32x64xf32>
    %78 = vector.broadcast %76 : vector<1x64xf32> to vector<32x64xf32>
    %79 = arith.addf %77, %78 : vector<32x64xf32>
    %cst_32 = arith.constant 0.000000e+00 : f32
    %80 = vector.broadcast %cst_32 : f32 to vector<32x64xf32>
    %81 = arith.cmpf ogt, %79, %80 : vector<32x64xf32>
    %cst_33 = arith.constant 2.000000e-01 : f32
    %82 = vector.broadcast %cst_33 : f32 to vector<32x64xf32>
    %83 = arith.mulf %82, %79 : vector<32x64xf32>
    %84 = arith.select %81, %79, %83 : vector<32x64xi1>, vector<32x64xf32>
    %cst_34 = arith.constant -1.000000e+30 : f32
    %85 = vector.broadcast %cst_34 : f32 to vector<32x64xf32>
    %86 = arith.select %14, %84, %85 : vector<32x64xi1>, vector<32x64xf32>
    %cst_35 = arith.constant dense<0xFF800000> : vector<32xf32>
    %87 = vector.multi_reduction <maximumf>, %86, %cst_35 [1] : vector<32x64xf32> to vector<32xf32>
    %88 = vector.shape_cast %87 : vector<32xf32> to vector<32x1xf32>
    %89 = vector.broadcast %88 : vector<32x1xf32> to vector<32x64xf32>
    %90 = arith.subf %86, %89 : vector<32x64xf32>
    %91 = math.exp %90 : vector<32x64xf32>
    %cst_36 = arith.constant 0.000000e+00 : f32
    %92 = vector.broadcast %cst_36 : f32 to vector<32x64xf32>
    %93 = arith.select %14, %91, %92 : vector<32x64xi1>, vector<32x64xf32>
    %cst_37 = arith.constant dense<0.000000e+00> : vector<32xf32>
    %94 = vector.multi_reduction <add>, %93, %cst_37 [1] : vector<32x64xf32> to vector<32xf32>
    %95 = vector.shape_cast %94 : vector<32xf32> to vector<32x1xf32>
    %cst_38 = arith.constant 0.000000e+00 : f32
    %96 = vector.broadcast %cst_38 : f32 to vector<32x1xf32>
    %97 = arith.cmpf ogt, %95, %96 : vector<32x1xf32>
    %98 = tpu.reciprocal %95 {approx = true} : vector<32x1xf32> -> vector<32x1xf32>
    %cst_39 = arith.constant 0.000000e+00 : f32
    %99 = vector.broadcast %cst_39 : f32 to vector<32x1xf32>
    %100 = arith.select %97, %98, %99 : vector<32x1xi1>, vector<32x1xf32>
    %101 = vector.broadcast %100 : vector<32x1xf32> to vector<32x64xf32>
    %102 = arith.mulf %93, %101 : vector<32x64xf32>
    %103 = vector.extract_strided_slice %2 {offsets = [0, 64], sizes = [64, 32], strides = [1, 1]} : vector<64x128xf32> to vector<64x32xf32>
    %cst_40 = arith.constant dense<0.000000e+00> : vector<32x32xf32>
    %104 = tpu.matmul %102, %103, %cst_40 {dimension_numbers = #tpu.dot_dimension_numbers<[1], [0], [0], [1], [0, 0, 1, 1], [], []>} : vector<32x64xf32>, vector<64x32xf32>, vector<32x32xf32> -> vector<32x32xf32>
    %105 = vector.extract_strided_slice %10 {offsets = [0, 3], sizes = [32, 1], strides = [1, 1]} : vector<32x4xf32> to vector<32x1xf32>
    %106 = vector.extract_strided_slice %11 {offsets = [3, 0], sizes = [1, 64], strides = [1, 1]} : vector<4x64xf32> to vector<1x64xf32>
    %107 = vector.broadcast %105 : vector<32x1xf32> to vector<32x64xf32>
    %108 = vector.broadcast %106 : vector<1x64xf32> to vector<32x64xf32>
    %109 = arith.addf %107, %108 : vector<32x64xf32>
    %cst_41 = arith.constant 0.000000e+00 : f32
    %110 = vector.broadcast %cst_41 : f32 to vector<32x64xf32>
    %111 = arith.cmpf ogt, %109, %110 : vector<32x64xf32>
    %cst_42 = arith.constant 2.000000e-01 : f32
    %112 = vector.broadcast %cst_42 : f32 to vector<32x64xf32>
    %113 = arith.mulf %112, %109 : vector<32x64xf32>
    %114 = arith.select %111, %109, %113 : vector<32x64xi1>, vector<32x64xf32>
    %cst_43 = arith.constant -1.000000e+30 : f32
    %115 = vector.broadcast %cst_43 : f32 to vector<32x64xf32>
    %116 = arith.select %14, %114, %115 : vector<32x64xi1>, vector<32x64xf32>
    %cst_44 = arith.constant dense<0xFF800000> : vector<32xf32>
    %117 = vector.multi_reduction <maximumf>, %116, %cst_44 [1] : vector<32x64xf32> to vector<32xf32>
    %118 = vector.shape_cast %117 : vector<32xf32> to vector<32x1xf32>
    %119 = vector.broadcast %118 : vector<32x1xf32> to vector<32x64xf32>
    %120 = arith.subf %116, %119 : vector<32x64xf32>
    %121 = math.exp %120 : vector<32x64xf32>
    %cst_45 = arith.constant 0.000000e+00 : f32
    %122 = vector.broadcast %cst_45 : f32 to vector<32x64xf32>
    %123 = arith.select %14, %121, %122 : vector<32x64xi1>, vector<32x64xf32>
    %cst_46 = arith.constant dense<0.000000e+00> : vector<32xf32>
    %124 = vector.multi_reduction <add>, %123, %cst_46 [1] : vector<32x64xf32> to vector<32xf32>
    %125 = vector.shape_cast %124 : vector<32xf32> to vector<32x1xf32>
    %cst_47 = arith.constant 0.000000e+00 : f32
    %126 = vector.broadcast %cst_47 : f32 to vector<32x1xf32>
    %127 = arith.cmpf ogt, %125, %126 : vector<32x1xf32>
    %128 = tpu.reciprocal %125 {approx = true} : vector<32x1xf32> -> vector<32x1xf32>
    %cst_48 = arith.constant 0.000000e+00 : f32
    %129 = vector.broadcast %cst_48 : f32 to vector<32x1xf32>
    %130 = arith.select %127, %128, %129 : vector<32x1xi1>, vector<32x1xf32>
    %131 = vector.broadcast %130 : vector<32x1xf32> to vector<32x64xf32>
    %132 = arith.mulf %123, %131 : vector<32x64xf32>
    %133 = vector.extract_strided_slice %2 {offsets = [0, 96], sizes = [64, 32], strides = [1, 1]} : vector<64x128xf32> to vector<64x32xf32>
    %cst_49 = arith.constant dense<0.000000e+00> : vector<32x32xf32>
    %134 = tpu.matmul %132, %133, %cst_49 {dimension_numbers = #tpu.dot_dimension_numbers<[1], [0], [0], [1], [0, 0, 1, 1], [], []>} : vector<32x64xf32>, vector<64x32xf32>, vector<32x32xf32> -> vector<32x32xf32>
    %135 = tpu.concatenate %44, %74, %104, %134 in 1 : vector<32x32xf32>, vector<32x32xf32>, vector<32x32xf32>, vector<32x32xf32> -> vector<32x128xf32>
    %c0_50 = arith.constant 0 : index
    %c0_51 = arith.constant 0 : index
    %136 = vector.load %arg6[%c0_50, %c0_51] : memref<32x128xf32, #tpu.memory_space<vmem>>, vector<32x128xf32>
    tpu.vector_store %arg6[%c0_50, %c0_51], %135 {strides = array<i32>} : memref<32x128xf32, #tpu.memory_space<vmem>>, vector<32x128xf32>,
    return
  }
  func.func @transform_0(%arg0: i32) -> (i32, i32) {
    %c0_i32 = arith.constant 0 : i32
    %c0_i32_0 = arith.constant 0 : i32
    %c0_i32_1 = arith.constant 0 : i32
    return %c0_i32, %c0_i32_0 : i32, i32
  }
  func.func @transform_1(%arg0: i32) -> (i32, i32) {
    %c0_i32 = arith.constant 0 : i32
    %c0_i32_0 = arith.constant 0 : i32
    return %arg0, %c0_i32 : i32, i32
  }
  func.func @transform_2(%arg0: i32) -> (i32, i32) {
    %c0_i32 = arith.constant 0 : i32
    %c0_i32_0 = arith.constant 0 : i32
    %c0_i32_1 = arith.constant 0 : i32
    return %c0_i32, %c0_i32_0 : i32, i32
  }
  func.func @transform_3(%arg0: i32) -> (i32, i32) {
    %c0_i32 = arith.constant 0 : i32
    %c0_i32_0 = arith.constant 0 : i32
    %c0_i32_1 = arith.constant 0 : i32
    return %c0_i32, %c0_i32_0 : i32, i32
  }
  func.func @transform_4(%arg0: i32) -> (i32, i32) {
    %c0_i32 = arith.constant 0 : i32
    %c0_i32_0 = arith.constant 0 : i32
    return %arg0, %c0_i32 : i32, i32
  }
  func.func @transform_5(%arg0: i32) -> (i32, i32) {
    %c0_i32 = arith.constant 0 : i32
    %c0_i32_0 = arith.constant 0 : i32
    return %arg0, %c0_i32 : i32, i32
  }
}

</mosaic_0001>

<bundles_post_ra>
// kernel: tpu_custom_call.1
= control target key start
LH: loop header
LB: loop body
LE: loop exit
PB: predicated region body
PF: predicated region fallthrough
CT: control target
= control target key end

     0   :  { %10 = vsyncpa [#allocation3], 0  ;;  %s3093_s0 = inlined_call_operand.vmem [shape: f32[64,16], index: 0, kind: input, shape index: {}]   ;;  %s3094_s1 = inlined_call_operand.vmem [shape: f32[64,16], index: 1, kind: input, shape index: {}]   ;;  %s3095_s2 = inlined_call_operand.vmem [shape: f32[16,128], index: 2, kind: input, shape index: {}]   ;;  %s3096_s3 = inlined_call_operand.vmem [shape: f32[128,8], index: 3, kind: input, shape index: {}]   ;;  %s3097_s4 = inlined_call_operand.vmem [shape: s8[64,64], index: 4, kind: input, shape index: {}]   ;;  %s3098_s5 = inlined_call_operand.hbm [shape: f32[64,128], index: 5, kind: output, shape index: {}]  }
   0x1   :  { %12 = vsyncpa [#allocation3 + $0x1], 0  ;;  %s2409_s18 = smov 0   ;;  %s2411_s19 = smov 0  }
   0x2   :  { %s2413_s20 = smov 0   ;;  %s2415_s21 = smov 0  }
   0x3 LB: > { %s2430_s22 = sadd.s32 4294967295, %s2366_s21   ;;  %s1830_s23 = sadd.s32 4294967294, %s2366_s21   ;;  %s2366_s21 = sphi %s2415_s21, %s3112_s21   ;;  %s2362_s20 = sphi %s2413_s20, %s3111_s20   ;;  %s2358_s19 = sphi %s2411_s19, %s3110_s19   ;;  %s2354_s18 = sphi %s2409_s18, %s3109_s18  }
   0x4   : > { %s2434_s24 = sadd.s32 1, %s2366_s21   ;;  %s140_s25 = sadd.s32 1, %s2362_s20 }
   0x5   : > { %s137_s26 = ssub.s32 %s2366_s21, %s2434_s24  ;;  %p150_p0 = scmp.ne.s32.totalorder %s2362_s20, %s2358_s19 }
   0x6   : > { %p138_p1 = scmp.eq.s32.totalorder %s137_s26, 0  ;;  %p151_p2 = scmp.eq.s32.totalorder %s2430_s22, 1 }
   0x7   : > { %p156_p3 = scmp.ne.s32.totalorder %s2358_s19, %s2354_s18  ;;  %p157_p4 = scmp.eq.s32.totalorder %s1830_s23, 1 }
   0x8   : > { %s2445_s27 = scalar_select %p138_p1, %s2362_s20, %s140_s25  }
   0x9   : > { %p2447_p5 = por %p151_p2, %p150_p0  ;;  %p2451_p6 = por %p157_p4, %p156_p3 }
   0xa   : > { %p1833_p7 = scmp.ge.s32.totalorder %s2366_s21, 1  ;;  %p200_p8 = scmp.lt.s32.totalorder %s2366_s21, 3 }
   0xc   : > { %p201_p9 = pnand %p1833_p7, %p200_p8 }
   0xd   : > { %s1835_s9 = sshll.u32 (!%p201_p9), %s2430_s22, 2  ;;  %s2368_s30 = smov (!%p201_p9), 124  }
   0xe   : > { %204 = sbr.rel (%p201_p9) target bundleno = 1366 (0x556), region = 40  ;;  %p233_p10 = scmp.lt.s32.totalorder (!%p201_p9), %s1835_s9, 7 }
   0xf   : > { %s2370_s17 = smov (!%p201_p9), 64   ;;  %s2371_s23 = smov (!%p201_p9), 32  }
  0x10   : > { %p238_p11 = scmp.lt.s32.totalorder (!%p201_p9), %s2430_s22, 1 }
  0x13   : > { %v254_v0 = vld [vmem:[%s3095_s2 + $0x8] sm:$0xff]  ;;  %v253_v1 = vld [vmem:[%s3095_s2] sm:$0xff]  ;;  %s3114_s9 = smov (!%p233_p10, %s1835_s9), 7  ;;  %v501_v4 = vld [vmem:[%s3096_s3 + $0x78] sm:$0xff]  ;;  %vm255_vm0 = vcmask 130048   ;;  %v2372_v58 = vmov 1  }
  0x14   : > { %1996 = vmatprep.subr.mxu1 %v254_v0  ;;  %1980 = vmatprep.subr.mxu0 %v254_v0  ;;  %v245_v2 = vld [vmem:[%s3093_s0] sm:$0xff]  ;;  %v246_v3 = vld [vmem:[%s3093_s0 + $0x8] sm:$0xff]  ;;  %v247_v5 = vld [vmem:[%s3093_s0 + $0x10] sm:$0xff]  ;;  %s1836_s26 = sshll.u32 %s3114_s9, 3  ;;  %v2373_v59 = vmov 0   ;;  %vm863_vm8 = vcmask 523264  }
  0x15   : > { %1997 = vmatpush3.msra.mxu1 %v254_v0  ;;  %1981 = vmatpush3.msra.mxu0 %v254_v0  ;;  %v499_v6 = vld [vmem:[%s3096_s3 + $0x68] sm:$0xff]  ;;  %s236_s8 = scalar_lea.vmem %s3094_s1, %s1836_s26  ;;  %v248_v7 = vld [vmem:[%s3093_s0 + $0x18] sm:$0xff]  ;;  %v500_v8 = vld [vmem:[%s3096_s3 + $0x70] sm:$0xff]  ;;  %s1871_s9 = sshll.u32 %s2430_s22, 9 }
  0x16   : > { %1998 = vmatprep.subr.mxu1 %v253_v1  ;;  %1982 = vmatprep.subr.mxu0 %v253_v1  ;;  %v385_v9 = vld [vmem:[%s236_s8] sm:$0xff]  ;;  %v386_v10 = vld [vmem:[%s236_s8 + $0x8] sm:$0xff]  ;;  %v387_v11 = vld [vmem:[%s236_s8 + $0x10] sm:$0xff]  ;;  %s239_s25 = scalar_select %p238_p11, %s2430_s22, 1 }
  0x17   : > { %1999 = vmatpush3.msra.mxu1 %v253_v1  ;;  %1983 = vmatpush3.msra.mxu0 %v253_v1  ;;  %v249_v12 = vld [vmem:[%s3093_s0 + $0x20] sm:$0xff]  ;;  %v388_v14 = vld [vmem:[%s236_s8 + $0x18] sm:$0xff]  ;;  %v250_v16 = vld [vmem:[%s3093_s0 + $0x28] sm:$0xff]  ;;  %s229_s8 = sand.u32 1, %s2358_s19   ;;  %s3048_s22 = scalar_lea.hbm %s3098_s5, %s1871_s9 }
  0x18   : > { %1984 = vmatprep.mubr.msk.f32.mxu0 %vm255_vm0, %v245_v2  ;;  %653 = vrot.lane.b32.xlu0 %v501_v4, %s2368_s30  ;;  %v498_v13 = vld [vmem:[%s3096_s3 + $0x60] sm:$0xff]  ;;  %v497_v15 = vld [vmem:[%s3096_s3 + $0x58] sm:$0xff]  ;;  %v251_v17 = vld [vmem:[%s3093_s0 + $0x30] sm:$0xff]  ;;  %s1837_s26 = sshll.u32 %s239_s25, 3  ;;  %s1834_s11 = sshll.u32 %s229_s8, 5 }
  0x19   : > { %1985 = vmatmul.mubr.msk.f32.vlgmr.msra.gmra.mxu0 %vm255_vm0, %v246_v3  ;;  %649 = vrot.lane.b32.xlu1 %v499_v6, %s2368_s30  ;;  %v496_v18 = vld [vmem:[%s3096_s3 + $0x50] sm:$0xff]  ;;  %v495_v19 = vld [vmem:[%s3096_s3 + $0x48] sm:$0xff]  ;;  %v252_v20 = vld [vmem:[%s3093_s0 + $0x38] sm:$0xff]  ;;  %s241_s10 = scalar_lea.vmem %s3097_s4, %s1837_s26  ;;  %s231_s12 = scalar_lea.vmem [#allocation2], %s1834_s11 }
  0x1a   : > { %1987 = vmatprep.mubr.msk.f32.mxu0 %vm255_vm0, %v247_v5  ;;  %2006 = vmatprep.subr.mxu0 %v501_v4  ;;  %v494_v21 = vld [vmem:[%s3096_s3 + $0x40] sm:$0xff]  ;;  %v493_v22 = vld [vmem:[%s3096_s3 + $0x38] sm:$0xff]  ;;  %v492_v23 = vld [vmem:[%s3096_s3 + $0x30] sm:$0xff]  ;;  %s1756_s13 = sshll.u32 %s231_s12, 4  ;;  %s3053_s16 = scalar_lea.sflag [#allocation3], %s229_s8  ;;  %s3041_s13 = int_to_ptr.vmem [resolvable:$true] %s1756_s13 }
  0x1b   : > { %2000 = vmatprep.mubr.msk.f32.mxu1 %vm255_vm0, %v385_v9  ;;  %2007 = vmatpush3.msra.mxu0 %v501_v4  ;;  %v491_v24 = vld [vmem:[%s3096_s3 + $0x28] sm:$0xff]  ;;  %v490_v25 = vld [vmem:[%s3096_s3 + $0x20] sm:$0xff]  ;;  %v489_v26 = vld [vmem:[%s3096_s3 + $0x18] sm:$0xff] }
  0x1c   : > { %2001 = vmatmul.mubr.msk.f32.vlgmr.msra.gmra.mxu1 %vm255_vm0, %v386_v10  ;;  %651 = vrot.lane.b32.xlu0 %v500_v8, %s2368_s30  ;;  %v488_v27 = vld [vmem:[%s3096_s3 + $0x10] sm:$0xff]  ;;  %v487_v28 = vld [vmem:[%s3096_s3 + $0x8] sm:$0xff]  ;;  %v486_v29 = vld [vmem:[%s3096_s3] sm:$0xff] }
  0x1d   : > { %2003 = vmatprep.mubr.msk.f32.mxu1 %vm255_vm0, %v387_v11  ;;  %1988 = vmatmul.mubr.msk.f32.gmra.mxu0 %vm255_vm0, %v248_v7  ;;  %v2374_v7 = vmov 3  }
  0x1e   : > { %1990 = vmatprep.mubr.msk.f32.mxu0 %vm255_vm0, %v249_v12  ;;  %647 = vrot.lane.b32.xlu1 %v498_v13, %s2368_s30 }
  0x1f   : > { %2008 = vmatprep.subr.mxu0 %v500_v8  ;;  %2227 = vset.pattern.permute.xlu0 %v2372_v58 }
  0x20   : > { %2004 = vmatmul.mubr.msk.f32.gmra.mxu1 %vm255_vm0, %v388_v14  ;;  %645 = vrot.lane.b32.xlu0 %v497_v15, %s2368_s30 }
  0x21   : > { %1991 = vmatmul.mubr.msk.f32.gmra.mxu0 %vm255_vm0, %v250_v16  ;;  %2226 = vset.pattern.permute.xlu1 %v2373_v59 }
  0x22   : > { %1993 = vmatprep.mubr.msk.f32.mxu0 %vm255_vm0, %v251_v17  ;;  %643 = vrot.lane.b32.xlu1 %v496_v18, %s2368_s30 }
  0x23   : > { %2009 = vmatpush3.msra.mxu0 %v500_v8  ;;  %v2375_v8 = vmov 2  }
  0x24   : > { %641 = vrot.lane.b32.xlu0 %v495_v19, %s2368_s30  ;;  %2010 = vmatprep.subr.mxu0 %v499_v6 }
  0x25   : > { %1994 = vmatmul.mubr.msk.f32.gmra.mxu0 %vm255_vm0, %v252_v20 }
  0x26   : > { %639 = vrot.lane.b32.xlu1 %v494_v21, %s2368_s30  ;;  %2011 = vmatpush3.msra.mxu0 %v499_v6 }
  0x27   : > { %2012 = vmatprep.subr.mxu0 %v498_v13 }
  0x28   : > { %637 = vrot.lane.b32.xlu0 %v493_v22, %s2368_s30  ;;  %2013 = vmatpush3.msra.mxu0 %v498_v13 }
  0x29   : > { %2014 = vmatprep.subr.mxu0 %v497_v15 }
  0x2a   : > { %635 = vrot.lane.b32.xlu1 %v492_v23, %s2368_s30  ;;  %2015 = vmatpush3.msra.mxu0 %v497_v15 }
  0x2b   : > { %2016 = vmatprep.subr.mxu0 %v496_v18 }
  0x2c   : > { %633 = vrot.lane.b32.xlu0 %v491_v24, %s2368_s30  ;;  %2017 = vmatpush3.msra.mxu0 %v496_v18 }
  0x2d   : > { %2018 = vmatprep.subr.mxu0 %v495_v19 }
  0x2e   : > { %631 = vrot.lane.b32.xlu1 %v490_v25, %s2368_s30  ;;  %2019 = vmatpush3.msra.mxu0 %v495_v19 }
  0x2f   : > { %2020 = vmatprep.subr.mxu0 %v494_v21 }
  0x30   : > { %629 = vrot.lane.b32.xlu0 %v489_v26, %s2368_s30  ;;  %2021 = vmatpush3.msra.mxu0 %v494_v21 }
  0x31   : > { %2022 = vmatprep.subr.mxu0 %v493_v22 }
  0x32   : > { %627 = vrot.lane.b32.xlu1 %v488_v27, %s2368_s30  ;;  %2023 = vmatpush3.msra.mxu0 %v493_v22 }
  0x33   : > { %2024 = vmatprep.subr.mxu0 %v492_v23 }
  0x34   : > { %625 = vrot.lane.b32.xlu0 %v487_v28, %s2368_s30  ;;  %2025 = vmatpush3.msra.mxu0 %v492_v23 }
  0x35   : > { %2026 = vmatprep.subr.mxu0 %v491_v24 }
  0x36   : > { %623 = vrot.lane.b32.xlu1 %v486_v29, %s2368_s30  ;;  %2027 = vmatpush3.msra.mxu0 %v491_v24  ;;  %s2369_s30 = smov 96  }
  0x37   : > { %2028 = vmatprep.subr.mxu0 %v490_v25 }
  0x38   : > { %2029 = vmatpush3.msra.mxu0 %v490_v25  ;;  %v788_v25 = vld [vmem:[%s241_s10] sm:$0xff] }
  0x39   : > { %2030 = vmatprep.subr.mxu0 %v489_v26  ;;  %vm789_vm1 = vnez %v788_v25 }
  0x3a   : > { %2031 = vmatpush3.msra.mxu0 %v489_v26 }
  0x3b   : > { %2032 = vmatprep.subr.mxu0 %v488_v27 }
  0x3c   : > { %2033 = vmatpush3.msra.mxu0 %v488_v27 }
  0x3d   : > { %2034 = vmatprep.subr.mxu0 %v487_v28 }
  0x3e   : > { %2035 = vmatpush3.msra.mxu0 %v487_v28  ;;  %v2641_v28 = vsel %vm789_vm1, 16843009, %v2373_v59 }
  0x3f   : > { %2036 = vmatprep.subr.mxu0 %v486_v29 }
  0x40   : > { %2037 = vmatpush3.msra.mxu0 %v486_v29  ;;  %v834_v29 = vunpack.c.3.s8 %v2641_v28 }
  0x8a   : > { %v654_v30 = vpop.permute.xlu0 %653 }
  0x8b   : > { %2050 = vmatprep.subr.mxu1 %v654_v30  ;;  %v650_v31 = vpop.permute.xlu1 %649 }
  0x8c   : > { %2051 = vmatpush3.msra.mxu1 %v654_v30  ;;  %v832_v30 = vunpack.c.1.s8 %v2641_v28 }
  0x8e   : > { %v652_v32 = vpop.permute.xlu0 %651 }
  0x8f   : > { %2052 = vmatprep.subr.mxu1 %v652_v32 }
  0x90   : > { %2053 = vmatpush3.msra.mxu1 %v652_v32  ;;  %v648_v33 = vpop.permute.xlu1 %647 }
  0x91   : > { %2054 = vmatprep.subr.mxu1 %v650_v31 }
  0x92   : > { %2055 = vmatpush3.msra.mxu1 %v650_v31  ;;  %v646_v34 = vpop.permute.xlu0 %645 }
  0x93   : > { %2056 = vmatprep.subr.mxu1 %v648_v33 }
  0x94   : > { %2057 = vmatpush3.msra.mxu1 %v648_v33  ;;  %v644_v35 = vpop.permute.xlu1 %643  ;;  %v841_v33 = vpack.c.b16 %v834_v29, %v834_v29 }
  0x95   : > { %2058 = vmatprep.subr.mxu1 %v646_v34 }
  0x96   : > { %2059 = vmatpush3.msra.mxu1 %v646_v34  ;;  %v642_v36 = vpop.permute.xlu0 %641  ;;  %v837_v34 = vpack.c.b16 %v832_v30, %v832_v30 }
  0x97   : > { %2060 = vmatprep.subr.mxu1 %v644_v35 }
  0x98   : > { %2061 = vmatpush3.msra.mxu1 %v644_v35  ;;  %v640_v37 = vpop.permute.xlu1 %639  ;;  %v810_v35 = vlaneseq }
  0x99   : > { %2062 = vmatprep.subr.mxu1 %v642_v36 }
  0x9a   : > { %2063 = vmatpush3.msra.mxu1 %v642_v36  ;;  %v638_v38 = vpop.permute.xlu0 %637 }
  0x9b   : > { %2064 = vmatprep.subr.mxu1 %v640_v37 }
  0x9c   : > { %2065 = vmatpush3.msra.mxu1 %v640_v37  ;;  %v636_v39 = vpop.permute.xlu1 %635 }
  0x9d   : > { %2066 = vmatprep.subr.mxu1 %v638_v38 }
  0x9e   : > { %2067 = vmatpush3.msra.mxu1 %v638_v38  ;;  %v634_v40 = vpop.permute.xlu0 %633  ;;  %v842_v38 = vpack.c.b8 %v841_v33, %v841_v33 }
  0x9f   : > { %2068 = vmatprep.subr.mxu1 %v636_v39 }
  0xa0   : > { %2069 = vmatpush3.msra.mxu1 %v636_v39  ;;  %v632_v41 = vpop.permute.xlu1 %631  ;;  %v838_v39 = vpack.c.b8 %v837_v34, %v837_v34  ;;  %vm846_vm2 = vnez %v842_v38 }
  0xa1   : > { %2070 = vmatprep.subr.mxu1 %v634_v40 }
  0xa2   : > { %2071 = vmatpush3.msra.mxu1 %v634_v40  ;;  %v630_v42 = vpop.permute.xlu0 %629  ;;  %v811_v40 = vshrl.u32 %v810_v35, 7  ;;  %vm844_vm3 = vnez %v838_v39 }
  0xa3   : > { %2072 = vmatprep.subr.mxu1 %v632_v41 }
  0xa4   : > { %2073 = vmatpush3.msra.mxu1 %v632_v41  ;;  %v628_v43 = vpop.permute.xlu1 %627 }
  0xa5   : > { %2074 = vmatprep.subr.mxu1 %v630_v42 }
  0xa6   : > { %2075 = vmatpush3.msra.mxu1 %v630_v42  ;;  %v626_v44 = vpop.permute.xlu0 %625 }
  0xa7   : > { %2076 = vmatprep.subr.mxu1 %v628_v43 }
  0xa8   : > { %2077 = vmatpush3.msra.mxu1 %v628_v43  ;;  %v624_v45 = vpop.permute.xlu1 %623  ;;  %v812_v43 = vsub.s32 0, %v811_v40 }
  0xa9   : > { %2078 = vmatprep.subr.mxu1 %v626_v44 }
  0xaa   : > { %2079 = vmatpush3.msra.mxu1 %v626_v44  ;;  %v831_v44 = vunpack.c.0.s8 %v2641_v28 }
  0xab   : > { %2080 = vmatprep.subr.mxu1 %v624_v45 }
  0xac   : > { %2081 = vmatpush3.msra.mxu1 %v624_v45  ;;  %v1035_v45 = vsub.s32 1, %v811_v40 }
  0xd9   : > { %v2567_v46 = vpop.f32.mrf.mxu0 }
  0xda   : > { %1123 = vrot.lane.b32.xlu1 %v2567_v46, %s2369_s30 }
  0xdb   : > { %v2571_v47 = vpop.f32.mrf.mxu0 }
  0xdc   : > { %v2002_v48 = vpop.f32.mrf.mxu1  ;;  %2038 = vmatprep.mubr.f32.mxu0 %v2571_v47 }
  0xdd   : > { %v2574_v49 = vpop.f32.mrf.mxu0  ;;  %2039 = vmatmul.mubr.f32.vlgmr.msra.gmra.mxu0 %v2567_v46 }
  0xde   : > { %v467_v50 = vpop.f32.mrf.mxu1  ;;  %1121 = vrot.lane.b32.xlu1 %v2571_v47, %s2369_s30 }
  0xdf   : > { %2082 = vmatprep.mubr.f32.mxu1 %v467_v50  ;;  %v2579_v51 = vpop.f32.mrf.mxu0  ;;  %v850_v50 = vsel %vm846_vm2, 16843009, %v2373_v59 }
  0xe0   : > { %2083 = vmatmul.mubr.f32.vlgmr.msra.gmra.mxu1 %v2002_v48  ;;  %v2005_v52 = vpop.f32.mrf.mxu1  ;;  %1125 = vrot.lane.b32.xlu0 %v2579_v51, %s2369_s30  ;;  %v1260_v48 = vsub.s32 2, %v811_v40 }
  0xe1   : > { %v2583_v53 = vpop.f32.mrf.mxu0  ;;  %2041 = vmatprep.mubr.f32.mxu0 %v2579_v51 }
  0xe2   : > { %v477_v54 = vpop.f32.mrf.mxu1  ;;  %1127 = vrot.lane.b32.xlu1 %v2574_v49, %s2369_s30  ;;  %2042 = vmatmul.mubr.f32.gmra.mxu0 %v2574_v49 }
  0xe3   : > { %2085 = vmatprep.mubr.f32.mxu1 %v477_v54  ;;  %v2589_v55 = vpop.f32.mrf.mxu0 }
  0xe4   : > { %2086 = vmatmul.mubr.f32.gmra.mxu1 %v2005_v52  ;;  %1129 = vrot.lane.b32.xlu0 %v2589_v55, %s2369_s30  ;;  %v848_v52 = vsel %vm844_vm3, 16843009, %v2373_v59 }
  0xe5   : > { %v1995_v56 = vpop.f32.mrf.mxu0  ;;  %2044 = vmatprep.mubr.f32.mxu0 %v2589_v55 }
  0xe6   : > { %1131 = vrot.lane.b32.xlu1 %v2583_v53, %s2369_s30  ;;  %2088 = vmatprep.subr.mxu0 %v1995_v56 }
  0xe7   : > { %v376_v57 = vpop.f32.mrf.mxu0  ;;  %2089 = vmatpush3.msra.mxu0 %v1995_v56 }
  0xe8   : > { %1352 = vrot.lane.b32.xlu0 %v1995_v56, %s2370_s17  ;;  %2090 = vmatprep.subr.mxu0 %v376_v57 }
  0xe9   : > { %2091 = vmatpush3.msra.mxu0 %v376_v57 }
  0xea   : > { %1135 = vrot.lane.b32.xlu1 %v1995_v56, %s2369_s30  ;;  %2092 = vmatprep.subr.mxu0 %v2583_v53 }
  0xeb   : > { %2093 = vmatpush3.msra.mxu0 %v2583_v53 }
  0xec   : > { %1133 = vrot.lane.b32.xlu0 %v376_v57, %s2369_s30  ;;  %2094 = vmatprep.subr.mxu0 %v2589_v55 }
  0xed   : > { %2095 = vmatpush3.msra.mxu0 %v2589_v55 }
  0xee   : > { %2096 = vmatprep.subr.mxu0 %v2574_v49  ;;  %2045 = vmatmul.mubr.f32.gmra.mxu0 %v2583_v53 }
  0xef   : > { %2097 = vmatpush3.msra.mxu0 %v2574_v49  ;;  %1569 = vrot.lane.b32.xlu1 %v1995_v56, %s2371_s23 }
  0xf0   : > { %2098 = vmatprep.subr.mxu0 %v2579_v51  ;;  %2047 = vmatprep.mubr.f32.mxu0 %v376_v57 }
  0xf1   : > { %2099 = vmatpush3.msra.mxu0 %v2579_v51  ;;  %1350 = vrot.lane.b32.xlu0 %v376_v57, %s2370_s17 }
  0xf2   : > { %2100 = vmatprep.subr.mxu0 %v2567_v46  ;;  %2048 = vmatmul.mubr.f32.gmra.mxu0 %v1995_v56  ;;  %v854_v56 = vunpack.c.0.s8 %v850_v50 }
  0xf3   : > { %2101 = vmatpush3.msra.mxu0 %v2567_v46  ;;  %1567 = vrot.lane.b32.xlu1 %v376_v57, %s2371_s23  ;;  %v852_v57 = vunpack.c.0.s8 %v848_v52 }
  0xf4   : > { %2102 = vmatprep.subr.mxu0 %v2571_v47  ;;  %vm2668_vm4 = vcmp.ne.s32.totalorder %v854_v56, 0 }
  0xf5   : > { %2103 = vmatpush3.msra.mxu0 %v2571_v47  ;;  %vm2672_vm5 = vcmp.ne.s32.totalorder %v852_v57, 0 }
 0x14c   : > { %v1124_v60 = vpop.permute.xlu1 %1123 }
 0x150   : > { %v1122_v61 = vpop.permute.xlu1 %1121 }
 0x152   : > { %v1126_v62 = vpop.permute.xlu0 %1125 }
 0x154   : > { %v1128_v63 = vpop.permute.xlu1 %1127 }
 0x156   : > { %v1130_v0 = vpop.permute.xlu0 %1129 }
 0x158   : > { %v1132_v1 = vpop.permute.xlu1 %1131 }
 0x15a   : > { %v2616_v2 = vpop.permute.xlu0 %1352 }
 0x15b   : > { %2132 = vmatprep.subr.mxu0 %v2616_v2 }
 0x15c   : > { %v1136_v3 = vpop.permute.xlu1 %1135 }
 0x15d   : > { %2110 = vmatprep.subr.mxu1 %v1136_v3 }
 0x15e   : > { %v1134_v4 = vpop.permute.xlu0 %1133  ;;  %2111 = vmatpush3.msra.mxu1 %v1136_v3 }
 0x15f   : > { %2112 = vmatprep.subr.mxu1 %v1134_v4 }
 0x160   : > { %2113 = vmatpush3.msra.mxu1 %v1134_v4 }
 0x161   : > { %2114 = vmatprep.subr.mxu1 %v1132_v1  ;;  %v2619_v5 = vpop.permute.xlu1 %1569 }
 0x162   : > { %2115 = vmatpush3.msra.mxu1 %v1132_v1 }
 0x163   : > { %2116 = vmatprep.subr.mxu1 %v1130_v0  ;;  %v2630_v20 = vpop.permute.xlu0 %1350 }
 0x164   : > { %2117 = vmatpush3.msra.mxu1 %v1130_v0 }
 0x165   : > { %2118 = vmatprep.subr.mxu1 %v1128_v63  ;;  %v2633_v22 = vpop.permute.xlu1 %1567 }
 0x166   : > { %2119 = vmatpush3.msra.mxu1 %v1128_v63 }
 0x167   : > { %2120 = vmatprep.subr.mxu1 %v1126_v62 }
 0x168   : > { %2121 = vmatpush3.msra.mxu1 %v1126_v62 }
 0x169   : > { %2122 = vmatprep.subr.mxu1 %v1124_v60 }
 0x16a   : > { %2123 = vmatpush3.msra.mxu1 %v1124_v60 }
 0x16b   : > { %2124 = vmatprep.subr.mxu1 %v1122_v61 }
 0x16c   : > { %2125 = vmatpush3.msra.mxu1 %v1122_v61 }
 0x16d   : > { %2154 = vmatprep.subr.mxu1 %v2619_v5 }
 0x19d   : > { %v2040_v12 = vpop.f32.mrf.mxu0 }
 0x19f   : > { %v568_v13 = vpop.f32.mrf.mxu0 }
 0x1a0   : > { %v2084_v6 = vpop.f32.mrf.mxu1 }
 0x1a1   : > { %1022 = vperm.xlu0 %2227, %v2084_v6   ;;  %797 = vperm.xlu1 %2226, %v2084_v6  }
 0x1a2   : > { %v737_v9 = vpop.f32.mrf.mxu1  ;;  %v2043_v14 = vpop.f32.mrf.mxu0 }
 0x1a4   : > { %v2087_v10 = vpop.f32.mrf.mxu1  ;;  %v578_v15 = vpop.f32.mrf.mxu0 }
 0x1a5   : > { %2229 = vset.pattern.permute.xlu0 %v2374_v7  ;;  %2228 = vset.pattern.permute.xlu1 %v2375_v8 }
 0x1a6   : > { %1464 = vperm.xlu0 %2229, %v2084_v6   ;;  %1247 = vperm.xlu1 %2228, %v2084_v6   ;;  %v747_v11 = vpop.f32.mrf.mxu1 }
 0x1aa   : > { %2230 = vset.pattern.permute.xlu0 %v2373_v59  ;;  %2231 = vset.pattern.permute.xlu1 %v2372_v58 }
 0x1ab   : > { %1018 = vperm.xlu1 %2231, %v737_v9   ;;  %792 = vperm.xlu0 %2230, %v737_v9  }
 0x1ae   : > { %v2046_v16 = vpop.f32.mrf.mxu0 }
 0x1af   : > { %2233 = vset.pattern.permute.xlu1 %v2374_v7  ;;  %2232 = vset.pattern.permute.xlu0 %v2375_v8 }
 0x1b0   : > { %1460 = vperm.xlu1 %2233, %v737_v9   ;;  %1243 = vperm.xlu0 %2232, %v737_v9   ;;  %v588_v17 = vpop.f32.mrf.mxu0 }
 0x1b2   : > { %v2049_v18 = vpop.f32.mrf.mxu0 }
 0x1b4   : > { %2234 = vset.pattern.permute.xlu1 %v2373_v59  ;;  %2239 = vset.pattern.permute.xlu0 %v2372_v58  ;;  %v598_v19 = vpop.f32.mrf.mxu0 }
 0x1b5   : > { %807 = vperm.xlu1 %2234, %v2087_v10   ;;  %1026 = vperm.xlu0 %2239, %v747_v11  }
 0x1b9   : > { %2235 = vset.pattern.permute.xlu1 %v2372_v58  ;;  %2241 = vset.pattern.permute.xlu0 %v2374_v7  ;;  %v835_v58 = vpack.c.b16 %v831_v44, %v831_v44 }
 0x1ba   : > { %1030 = vperm.xlu1 %2235, %v2087_v10   ;;  %1468 = vperm.xlu0 %2241, %v747_v11  }
 0x1bb   : > { %v836_v9 = vpack.c.b8 %v835_v58, %v835_v58 }
 0x1bd   : > { %vm843_vm11 = vnez %v836_v9 }
 0x1be   : > { %2236 = vset.pattern.permute.xlu1 %v2375_v8  ;;  %v847_v30 = vsel %vm843_vm11, 16843009, %v2373_v59 }
 0x1bf   : > { %1255 = vperm.xlu1 %2236, %v2087_v10   ;;  %v851_v39 = vunpack.c.0.s8 %v847_v30 }
 0x1c1   : > { %vm2712_vm14 = vcmp.ne.s32.totalorder %v851_v39, 0 }
 0x1c3   : > { %2237 = vset.pattern.permute.xlu1 %v2374_v7 }
 0x1c4   : > { %1472 = vperm.xlu1 %2237, %v2087_v10  }
 0x1c8   : > { %2238 = vset.pattern.permute.xlu1 %v2373_v59 }
 0x1c9   : > { %802 = vperm.xlu1 %2238, %v747_v11  }
 0x1cd   : > { %2240 = vset.pattern.permute.xlu1 %v2375_v8 }
 0x1ce   : > { %1251 = vperm.xlu1 %2240, %v747_v11  }
 0x1d2   : > { %1565 = vrot.lane.b32.xlu1 %v2583_v53, %s2371_s23 }
 0x1d8   : > { %756 = vxpose.xlu0.b32.start [1/8] (short) (narrow) %v568_v13, 8 }
 0x1dc   : > { %757 = vxpose.xlu0.b32.cont [2/8] (short) (narrow) %v2040_v12, 8 }
 0x1e0   : > { %758 = vxpose.xlu0.b32.cont [3/8] (short) (narrow) %v578_v15, 8 }
 0x1e4   : > { %759 = vxpose.xlu0.b32.cont [4/8] (short) (narrow) %v2043_v14, 8 }
 0x1e8   : > { %760 = vxpose.xlu0.b32.cont [5/8] (short) (narrow) %v588_v17, 8 }
 0x1ec   : > { %761 = vxpose.xlu0.b32.cont [6/8] (short) (narrow) %v2046_v16, 8 }
 0x1f0   : > { %762 = vxpose.xlu0.b32.cont [7/8] (short) (narrow) %v598_v19, 8 }
 0x1f4   : > { %763 = vxpose.xlu0.b32.end [8/8] (short) (narrow) %v2049_v18, 8 }
 0x21c   : > { %v1023_v21 = vpop.permute.xlu0 %1022  ;;  %v798_v23 = vpop.permute.xlu1 %797 }
 0x21d   : > { %1348 = vrot.lane.b32.xlu0 %v2583_v53, %s2370_s17  ;;  %v1477_v53 = vsub.s32 3, %v811_v40 }
 0x221   : > { %v1465_v24 = vpop.permute.xlu0 %1464  ;;  %v1248_v26 = vpop.permute.xlu1 %1247 }
 0x226   : > { %v2638_v27 = vpop.permute.xlu0 %792  ;;  %v2645_v31 = vpop.permute.xlu1 %1018 }
 0x22b   : > { %v2647_v32 = vpop.permute.xlu0 %1243  ;;  %v2649_v36 = vpop.permute.xlu1 %1460 }
 0x230   : > { %v2651_v37 = vpop.permute.xlu0 %1026  ;;  %v2653_v41 = vpop.permute.xlu1 %807 }
 0x235   : > { %v2655_v42 = vpop.permute.xlu0 %1468  ;;  %v1031_v63 = vpop.permute.xlu1 %1030 }
 0x254   : > { %v772_v54 = vpop.trf.xlu0 }
 0x255   : > { %v2660_v60 = vrot.slane %v772_v54, %v812_v43  ;;  %v1036_v61 = vrot.slane %v772_v54, %v1035_v45  ;;  %v2662_v62 = vrot.slane %v772_v54, %v1260_v48  ;;  %v2664_v0 = vrot.slane %v772_v54, %v1477_v53 }
 0x257   : > { %v1040_v1 = vadd.f32 %v1036_v61, %v1031_v63  ;;  %v815_v3 = vadd.f32 %v2660_v60, %v798_v23  ;;  %v1038_v4 = vadd.f32 %v1036_v61, %v1023_v21  ;;  %v1263_v6 = vadd.f32 %v2662_v62, %v1248_v26 }
 0x258   : > { %v1480_v16 = vadd.f32 %v2664_v0, %v1465_v24  ;;  %v814_v29 = vadd.f32 %v2660_v60, %v2638_v27  ;;  %v1037_v40 = vadd.f32 %v1036_v61, %v2645_v31  ;;  %v2710_v44 = vadd.f32 %v1036_v61, %v2651_v37 }
 0x259   : > { %vm1044_vm6 = vcmp.gt.f32.partialorder %v1040_v1, 0.0  ;;  %v1048_v10 = vmul.f32 0.2, %v1040_v1  ;;  %vm819_vm7 = vcmp.gt.f32.partialorder %v815_v3, 0.0  ;;  %v823_v11 = vmul.f32 0.2, %v815_v3 }
 0x25a   : > { %vm1042_vm9 = vcmp.gt.f32.partialorder %v1038_v4, 0.0  ;;  %v1046_v12 = vmul.f32 0.2, %v1038_v4  ;;  %v1271_v15 = vmul.f32 0.2, %v1263_v6  ;;  %vm1267_vm10 = vcmp.gt.f32.partialorder %v1263_v6, 0.0 }
 0x25b   : > { %v1052_v13 = vsel %vm1044_vm6, %v1040_v1, %v1048_v10  ;;  %v827_v14 = vsel %vm819_vm7, %v815_v3, %v823_v11  ;;  %v1488_v26 = vmul.f32 0.2, %v1480_v16  ;;  %vm1484_vm12 = vcmp.gt.f32.partialorder %v1480_v16, 0.0 }
 0x25c   : > { %v2679_v17 = vsel %vm2668_vm4, %v1052_v13, -1e+30  ;;  %v2683_v18 = vsel %vm2672_vm5, %v827_v14, -1e+30  ;;  %v1050_v19 = vsel %vm1042_vm9, %v1038_v4, %v1046_v12  ;;  %v1275_v25 = vsel %vm1267_vm10, %v1263_v6, %v1271_v15  ;;  %v1256_v14 = vpop.permute.xlu1 %1255 }
 0x25d   : > { %v1066_v21 = vsel %vm863_vm8, %v2679_v17, -inf  ;;  %v867_v23 = vsel %vm863_vm8, %v2683_v18, -inf  ;;  %v2691_v24 = vsel %vm2672_vm5, %v1050_v19, -1e+30  ;;  %v2700_v34 = vsel %vm2672_vm5, %v1275_v25, -1e+30 }
 0x25e   : > { %1067 = vmax.xlane.f32.xlu0 %v1066_v21  ;;  %868 = vmax.xlane.f32.xlu1 %v867_v23  ;;  %v1060_v33 = vsel %vm863_vm8, %v2691_v24, -inf  ;;  %v1492_v35 = vsel %vm1484_vm12, %v1480_v16, %v1488_v26  ;;  %v822_v38 = vmul.f32 0.2, %v814_v29  ;;  %vm818_vm13 = vcmp.gt.f32.partialorder %v814_v29, 0.0 }
 0x25f   : > { %v1285_v27 = vsel %vm863_vm8, %v2700_v34, -inf  ;;  %v2707_v43 = vsel %vm2672_vm5, %v1492_v35, -1e+30  ;;  %v1045_v50 = vmul.f32 0.2, %v1037_v40  ;;  %v1262_v31 = vadd.f32 %v2662_v62, %v2647_v32 }
 0x260   : > { %v826_v45 = vsel %vm818_vm13, %v814_v29, %v822_v38  ;;  %vm1041_vm15 = vcmp.gt.f32.partialorder %v1037_v40, 0.0  ;;  %v1502_v52 = vsel %vm863_vm8, %v2707_v43, -inf  ;;  %v2726_v37 = vadd.f32 %v2664_v0, %v2655_v42  ;;  %v1473_v19 = vpop.permute.xlu1 %1472 }
 0x261   : > { %v2722_v53 = vsel %vm2712_vm14, %v826_v45, -1e+30  ;;  %v1049_v54 = vsel %vm1041_vm15, %v1037_v40, %v1045_v50  ;;  %v1270_v56 = vmul.f32 0.2, %v1262_v31  ;;  %v1479_v57 = vadd.f32 %v2664_v0, %v2649_v36 }
 0x262   : > { %1061 = vmax.xlane.f32.xlu1 %v1060_v33  ;;  %vm1266_vm0 = vcmp.gt.f32.partialorder %v1262_v31, 0.0  ;;  %v864_v32 = vsel %vm863_vm8, %v2722_v53, -inf  ;;  %v2734_v58 = vsel %vm2712_vm14, %v1049_v54, -1e+30  ;;  %v817_v42 = vadd.f32 %v2660_v60, %v2653_v41 }
 0x263   : > { %v1274_v61 = vsel %vm1266_vm0, %v1262_v31, %v1270_v56  ;;  %v1487_v63 = vmul.f32 0.2, %v1479_v57  ;;  %vm1483_vm1 = vcmp.gt.f32.partialorder %v1479_v57, 0.0  ;;  %v1057_v1 = vsel %vm863_vm8, %v2734_v58, -inf }
 0x264   : > { %v2742_v36 = vsel %vm2712_vm14, %v1274_v61, -1e+30  ;;  %v825_v4 = vmul.f32 0.2, %v817_v42  ;;  %vm821_vm2 = vcmp.gt.f32.partialorder %v817_v42, 0.0  ;;  %v833_v13 = vunpack.c.2.s8 %v2641_v28 }
 0x265   : > { %v1491_v3 = vsel %vm1483_vm1, %v1479_v57, %v1487_v63  ;;  %v1282_v6 = vsel %vm863_vm8, %v2742_v36, -inf  ;;  %v1265_v16 = vadd.f32 %v2662_v62, %v1256_v14  ;;  %v1482_v25 = vadd.f32 %v2664_v0, %v1473_v19 }
 0x266   : > { %1286 = vmax.xlane.f32.xlu1 %v1285_v27  ;;  %v2750_v41 = vsel %vm2712_vm14, %v1491_v3, -1e+30  ;;  %v829_v9 = vsel %vm821_vm2, %v817_v42, %v825_v4  ;;  %v839_v15 = vpack.c.b16 %v833_v13, %v833_v13  ;;  %v1047_v40 = vmul.f32 0.2, %v2710_v44 }
 0x267   : > { %v1499_v10 = vsel %vm863_vm8, %v2750_v41, -inf  ;;  %v2758_v11 = vsel %vm2668_vm4, %v829_v9, -1e+30  ;;  %v1273_v23 = vmul.f32 0.2, %v1265_v16  ;;  %vm1269_vm3 = vcmp.gt.f32.partialorder %v1265_v16, 0.0 }
 0x268   : > { %v873_v12 = vsel %vm863_vm8, %v2758_v11, -inf  ;;  %v840_v21 = vpack.c.b8 %v839_v15, %v839_v15  ;;  %v1490_v29 = vmul.f32 0.2, %v1482_v25  ;;  %vm1486_vm7 = vcmp.gt.f32.partialorder %v1482_v25, 0.0 }
 0x269   : > { %v1277_v26 = vsel %vm1269_vm3, %v1265_v16, %v1273_v23  ;;  %vm1043_vm11 = vcmp.gt.f32.partialorder %v2710_v44, 0.0  ;;  %v1489_v57 = vmul.f32 0.2, %v2726_v37  ;;  %vm1485_vm13 = vcmp.gt.f32.partialorder %v2726_v37, 0.0 }
 0x26a   : > { %1503 = vmax.xlane.f32.xlu1 %v1502_v52  ;;  %vm845_vm6 = vnez %v840_v21  ;;  %v2779_v28 = vsel %vm2668_vm4, %v1277_v26, -1e+30  ;;  %v1494_v30 = vsel %vm1486_vm7, %v1482_v25, %v1490_v29  ;;  %v1051_v31 = vsel %vm1043_vm11, %v2710_v44, %v1047_v40 }
 0x26b   : > { %v1291_v0 = vsel %vm863_vm8, %v2779_v28, -inf  ;;  %v2785_v39 = vsel %vm2668_vm4, %v1494_v30, -1e+30  ;;  %v1493_v61 = vsel %vm1485_vm13, %v2726_v37, %v1489_v57 }
 0x26c   : > { %v1508_v45 = vsel %vm863_vm8, %v2785_v39, -inf }
 0x26e   : > { %865 = vmax.xlane.f32.xlu1 %v864_v32 }
 0x272   : > { %1058 = vmax.xlane.f32.xlu1 %v1057_v1 }
 0x274   : > { %1346 = vrot.lane.b32.xlu0 %v2589_v55, %s2370_s17 }
 0x276   : > { %1283 = vmax.xlane.f32.xlu1 %v1282_v6 }
 0x278   : > { %1344 = vrot.lane.b32.xlu0 %v2574_v49, %s2370_s17 }
 0x27a   : > { %1500 = vmax.xlane.f32.xlu1 %v1499_v10 }
 0x27c   : > { %1342 = vrot.lane.b32.xlu0 %v2579_v51, %s2370_s17 }
 0x27e   : > { %874 = vmax.xlane.f32.xlu1 %v873_v12 }
 0x280   : > { %1340 = vrot.lane.b32.xlu0 %v2567_v46, %s2370_s17 }
 0x28f   : > { %1563 = vrot.lane.b32.xlu1 %v2589_v55, %s2371_s23  ;;  %v803_v55 = vpop.permute.xlu1 %802 }
 0x293   : > { %1561 = vrot.lane.b32.xlu1 %v2574_v49, %s2371_s23  ;;  %v816_v49 = vadd.f32 %v2660_v60, %v803_v55  ;;  %v1252_v38 = vpop.permute.xlu1 %1251 }
 0x294   : > { %v1264_v27 = vadd.f32 %v2662_v62, %v1252_v38 }
 0x295   : > { %v824_v33 = vmul.f32 0.2, %v816_v49  ;;  %vm820_vm9 = vcmp.gt.f32.partialorder %v816_v49, 0.0 }
 0x296   : > { %v1272_v52 = vmul.f32 0.2, %v1264_v27  ;;  %vm1268_vm12 = vcmp.gt.f32.partialorder %v1264_v27, 0.0 }
 0x297   : > { %1559 = vrot.lane.b32.xlu1 %v2579_v51, %s2371_s23  ;;  %v849_v51 = vsel %vm845_vm6, 16843009, %v2373_v59  ;;  %v828_v60 = vsel %vm820_vm9, %v816_v49, %v824_v33  ;;  %v2826_v3 = vpop.permute.xlu1 %1565 }
 0x298   : > { %v853_v35 = vunpack.c.0.s8 %v849_v51  ;;  %v1276_v56 = vsel %vm1268_vm12, %v1264_v27, %v1272_v52 }
 0x29a   : > { %vm2787_vm10 = vcmp.ne.s32.totalorder %v853_v35, 0 }
 0x29b   : > { %v2798_v50 = vsel %vm2787_vm10, %v828_v60, -1e+30  ;;  %v2805_v62 = vsel %vm2787_vm10, %v1051_v31, -1e+30  ;;  %v2813_v44 = vsel %vm2787_vm10, %v1276_v56, -1e+30 }
 0x29c   : > { %v870_v54 = vsel %vm863_vm8, %v2798_v50, -inf  ;;  %v1063_v32 = vsel %vm863_vm8, %v2805_v62, -inf  ;;  %v1288_v63 = vsel %vm863_vm8, %v2813_v44, -inf  ;;  %v2820_v42 = vsel %vm2787_vm10, %v1493_v61, -1e+30 }
 0x29d   : > { %v1505_v1 = vsel %vm863_vm8, %v2820_v42, -inf }
 0x2bb   : > { %1292 = vmax.xlane.f32.xlu1 %v1291_v0 }
 0x2bf   : > { %1509 = vmax.xlane.f32.xlu1 %v1508_v45 }
 0x2c3   : > { %871 = vmax.xlane.f32.xlu1 %v870_v54 }
 0x2c7   : > { %1064 = vmax.xlane.f32.xlu1 %v1063_v32 }
 0x2cb   : > { %1289 = vmax.xlane.f32.xlu1 %v1288_v63 }
 0x2cf   : > { %1506 = vmax.xlane.f32.xlu1 %v1505_v1 }
 0x2e0   : > { %1557 = vrot.lane.b32.xlu1 %v2567_v46, %s2371_s23 }
 0x2e7   : > { %v869_v4 = vpop.xlane.xlu1 %868 }
 0x2e8   : > { %v877_v37 = vsub.f32 %v2683_v18, %v869_v4 }
 0x2ea   : > { %v882_v6 = vmul.f32 1.442695, %v877_v37 }
 0x2eb   : > { %v1062_v9 = vpop.xlane.xlu1 %1061 }
 0x2ec   : > { %v1070_v10 = vsub.f32 %v2691_v24, %v1062_v9  ;;  %2242 = vpow2.f32 %v882_v6  ;;  %v2833_v24 = vpop.permute.xlu0 %1348 }
 0x2ee   : > { %v1075_v12 = vmul.f32 1.442695, %v1070_v10 }
 0x2ef   : > { %v1287_v13 = vpop.xlane.xlu1 %1286 }
 0x2f0   : > { %2244 = vpow2.f32 %v1075_v12  ;;  %v1295_v14 = vsub.f32 %v2700_v34, %v1287_v13  ;;  %v1068_v30 = vpop.xlane.xlu0 %1067 }
 0x2f1   : > { %v1072_v0 = vsub.f32 %v2679_v17, %v1068_v30 }
 0x2f2   : > { %v1300_v15 = vmul.f32 1.442695, %v1295_v14 }
 0x2f3   : > { %v1504_v16 = vpop.xlane.xlu1 %1503  ;;  %v1079_v31 = vmul.f32 1.442695, %v1072_v0 }
 0x2f4   : > { %2246 = vpow2.f32 %v1300_v15  ;;  %v1512_v46 = vsub.f32 %v2707_v43, %v1504_v16 }
 0x2f6   : > { %v1517_v19 = vmul.f32 1.442695, %v1512_v46 }
 0x2f7   : > { %v866_v21 = vpop.xlane.xlu1 %865 }
 0x2f8   : > { %2248 = vpow2.f32 %v1517_v19  ;;  %v876_v18 = vsub.f32 %v2722_v53, %v866_v21 }
 0x2f9   : > { %v2243_v55 = vpop.eup %2242 }
 0x2fa   : > { %v880_v23 = vmul.f32 1.442695, %v876_v18  ;;  %v2845_v33 = vsel %vm2672_vm5, %v2243_v55, 0.0 }
 0x2fb   : > { %v1059_v25 = vpop.xlane.xlu1 %1058  ;;  %v895_v60 = vsel %vm863_vm8, %v2845_v33, 0.0 }
 0x2fc   : > { %2250 = vpow2.f32 %v880_v23  ;;  %v1069_v26 = vsub.f32 %v2734_v58, %v1059_v25 }
 0x2fd   : > { %v2245_v29 = vpop.eup %2244 }
 0x2fe   : > { %v1073_v34 = vmul.f32 1.442695, %v1069_v26  ;;  %v2838_v49 = vsel %vm2672_vm5, %v2245_v29, 0.0 }
 0x2ff   : > { %v1284_v43 = vpop.xlane.xlu1 %1283  ;;  %v1088_v51 = vsel %vm863_vm8, %v2838_v49, 0.0 }
 0x300   : > { %2252 = vpow2.f32 %v1073_v34  ;;  %v1294_v53 = vsub.f32 %v2742_v36, %v1284_v43  ;;  %1089 = vadd.xlane.f32.xlu0 %v1088_v51 }
 0x301   : > { %v2247_v58 = vpop.eup %2246 }
 0x302   : > { %v1298_v35 = vmul.f32 1.442695, %v1294_v53  ;;  %v2853_v36 = vsel %vm2672_vm5, %v2247_v58, 0.0 }
 0x303   : > { %v1501_v38 = vpop.xlane.xlu1 %1500  ;;  %v1313_v54 = vsel %vm863_vm8, %v2853_v36, 0.0 }
 0x304   : > { %2254 = vpow2.f32 %v1298_v35  ;;  %v1511_v40 = vsub.f32 %v2750_v41, %v1501_v38  ;;  %896 = vadd.xlane.f32.xlu1 %v895_v60 }
 0x305   : > { %v2249_v27 = vpop.eup %2248 }
 0x306   : > { %v1515_v45 = vmul.f32 1.442695, %v1511_v40  ;;  %v2860_v56 = vsel %vm2672_vm5, %v2249_v27, 0.0 }
 0x307   : > { %v875_v52 = vpop.xlane.xlu1 %874  ;;  %v1530_v32 = vsel %vm863_vm8, %v2860_v56, 0.0 }
 0x308   : > { %2256 = vpow2.f32 %v1515_v45  ;;  %v879_v17 = vsub.f32 %v2758_v11, %v875_v52  ;;  %1314 = vadd.xlane.f32.xlu1 %v1313_v54 }
 0x309   : > { %v2251_v41 = vpop.eup %2250  ;;  %2258 = vpow2.f32 %v1079_v31 }
 0x30a   : > { %v886_v57 = vmul.f32 1.442695, %v879_v17  ;;  %v2866_v61 = vsel %vm2712_vm14, %v2251_v41, 0.0 }
 0x30b   : > { %v892_v11 = vsel %vm863_vm8, %v2866_v61, 0.0  ;;  %v2900_v19 = vpop.permute.xlu1 %1563 }
 0x30c   : > { %2260 = vpow2.f32 %v886_v57  ;;  %1531 = vadd.xlane.f32.xlu1 %v1530_v32 }
 0x30d   : > { %v2253_v63 = vpop.eup %2252 }
 0x30e   : > { %v2872_v8 = vsel %vm2712_vm14, %v2253_v63, 0.0 }
 0x30f   : > { %v1085_v37 = vsel %vm863_vm8, %v2872_v8, 0.0  ;;  %v2902_v21 = vpop.permute.xlu1 %1561 }
 0x310   : > { %893 = vadd.xlane.f32.xlu1 %v892_v11 }
 0x311   : > { %v2255_v1 = vpop.eup %2254 }
 0x312   : > { %v2876_v4 = vsel %vm2712_vm14, %v2255_v1, 0.0 }
 0x313   : > { %v1310_v6 = vsel %vm863_vm8, %v2876_v4, 0.0  ;;  %v2904_v18 = vpop.permute.xlu1 %1559 }
 0x314   : > { %1086 = vadd.xlane.f32.xlu1 %v1085_v37  ;;  %1311 = vadd.xlane.f32.xlu0 %v1310_v6  ;;  %v1347_v6 = vpop.permute.xlu0 %1346 }
 0x315   : > { %v2257_v9 = vpop.eup %2256 }
 0x316   : > { %v2884_v10 = vsel %vm2712_vm14, %v2257_v9, 0.0  ;;  %v2259_v13 = vpop.eup %2258 }
 0x317   : > { %v1527_v12 = vsel %vm863_vm8, %v2884_v10, 0.0  ;;  %v2896_v46 = vsel %vm2668_vm4, %v2259_v13, 0.0 }
 0x318   : > { %1528 = vadd.xlane.f32.xlu0 %v1527_v12  ;;  %v1094_v48 = vsel %vm863_vm8, %v2896_v46, 0.0  ;;  %v1345_v9 = vpop.permute.xlu0 %1344 }
 0x319   : > { %v2261_v14 = vpop.eup %2260 }
 0x31a   : > { %v2890_v15 = vsel %vm2668_vm4, %v2261_v14, 0.0 }
 0x31b   : > { %v901_v16 = vsel %vm863_vm8, %v2890_v15, 0.0 }
 0x31c   : > { %902 = vadd.xlane.f32.xlu0 %v901_v16  ;;  %v1343_v14 = vpop.permute.xlu0 %1342 }
 0x320   : > { %1095 = vadd.xlane.f32.xlu0 %v1094_v48  ;;  %v1341_v59 = vpop.permute.xlu0 %1340 }
 0x344   : > { %v1293_v23 = vpop.xlane.xlu1 %1292 }
 0x345   : > { %v1297_v25 = vsub.f32 %v2779_v28, %v1293_v23 }
 0x347   : > { %v1304_v55 = vmul.f32 1.442695, %v1297_v25 }
 0x348   : > { %v1510_v26 = vpop.xlane.xlu1 %1509 }
 0x349   : > { %2262 = vpow2.f32 %v1304_v55  ;;  %v1514_v29 = vsub.f32 %v2785_v39, %v1510_v26 }
 0x34b   : > { %v1521_v34 = vmul.f32 1.442695, %v1514_v29 }
 0x34c   : > { %v872_v43 = vpop.xlane.xlu1 %871 }
 0x34d   : > { %2264 = vpow2.f32 %v1521_v34  ;;  %v878_v51 = vsub.f32 %v2798_v50, %v872_v43 }
 0x34f   : > { %v884_v30 = vmul.f32 1.442695, %v878_v51 }
 0x350   : > { %v1065_v53 = vpop.xlane.xlu1 %1064 }
 0x351   : > { %2266 = vpow2.f32 %v884_v30  ;;  %v1071_v58 = vsub.f32 %v2805_v62, %v1065_v53 }
 0x353   : > { %v1077_v35 = vmul.f32 1.442695, %v1071_v58 }
 0x354   : > { %v1290_v0 = vpop.xlane.xlu1 %1289 }
 0x355   : > { %2268 = vpow2.f32 %v1077_v35  ;;  %v1296_v28 = vsub.f32 %v2813_v44, %v1290_v0 }
 0x356   : > { %v2263_v38 = vpop.eup %2262 }
 0x357   : > { %v1302_v60 = vmul.f32 1.442695, %v1296_v28  ;;  %v2913_v39 = vsel %vm2668_vm4, %v2263_v38, 0.0 }
 0x358   : > { %v1507_v40 = vpop.xlane.xlu1 %1506  ;;  %v1319_v50 = vsel %vm863_vm8, %v2913_v39, 0.0 }
 0x359   : > { %2270 = vpow2.f32 %v1302_v60  ;;  %v1513_v27 = vsub.f32 %v2820_v42, %v1507_v40  ;;  %1320 = vadd.xlane.f32.xlu1 %v1319_v50 }
 0x35a   : > { %v2265_v62 = vpop.eup %2264 }
 0x35b   : > { %v1519_v45 = vmul.f32 1.442695, %v1513_v27  ;;  %v2920_v31 = vsel %vm2668_vm4, %v2265_v62, 0.0 }
 0x35c   : > { %v1536_v44 = vsel %vm863_vm8, %v2920_v31, 0.0  ;;  %v1558_v12 = vpop.permute.xlu1 %1557 }
 0x35d   : > { %2272 = vpow2.f32 %v1519_v45  ;;  %1537 = vadd.xlane.f32.xlu1 %v1536_v44 }
 0x35e   : > { %v2267_v52 = vpop.eup %2266 }
 0x35f   : > { %v2926_v54 = vsel %vm2787_vm10, %v2267_v52, 0.0 }
 0x360   : > { %v898_v42 = vsel %vm863_vm8, %v2926_v54, 0.0 }
 0x361   : > { %899 = vadd.xlane.f32.xlu1 %v898_v42 }
 0x362   : > { %v2269_v17 = vpop.eup %2268 }
 0x363   : > { %v2932_v7 = vsel %vm2787_vm10, %v2269_v17, 0.0 }
 0x364   : > { %v1091_v41 = vsel %vm863_vm8, %v2932_v7, 0.0 }
 0x365   : > { %1092 = vadd.xlane.f32.xlu1 %v1091_v41 }
 0x366   : > { %v2271_v57 = vpop.eup %2270 }
 0x367   : > { %v2938_v32 = vsel %vm2787_vm10, %v2271_v57, 0.0 }
 0x368   : > { %v1316_v63 = vsel %vm863_vm8, %v2938_v32, 0.0 }
 0x369   : > { %1317 = vadd.xlane.f32.xlu0 %v1316_v63 }
 0x36a   : > { %v2273_v11 = vpop.eup %2272 }
 0x36b   : > { %v2944_v1 = vsel %vm2787_vm10, %v2273_v11, 0.0 }
 0x36c   : > { %v1533_v37 = vsel %vm863_vm8, %v2944_v1, 0.0 }
 0x36d   : > { %1534 = vadd.xlane.f32.xlu0 %v1533_v37 }
 0x376   : > { %1555 = vrot.lane.b32.xlu1 %v2571_v47, %s2371_s23 }
 0x383   : > { %1338 = vrot.lane.b32.xlu0 %v2571_v47, %s2370_s17 }
 0x389   : > { %v1090_v23 = vpop.xlane.xlu0 %1089 }
 0x38a   : > { %vm1098_vm14 = vcmp.gt.f32.partialorder %v1090_v23, 0.0 }
 0x38d   : > { %v897_v13 = vpop.xlane.xlu1 %896 }
 0x38e   : > { %2274 = vrcp.f32 %v897_v13  ;;  %vm905_vm4 = vcmp.gt.f32.partialorder %v897_v13, 0.0 }
 0x391   : > { %v2952_v16 = vpop.xlane.xlu1 %1314 }
 0x392   : > { %vm1323_vm3 = vcmp.gt.f32.partialorder %v2952_v16, 0.0 }
 0x395   : > { %v2954_v48 = vpop.xlane.xlu1 %1531 }
 0x396   : > { %vm1540_vm10 = vcmp.gt.f32.partialorder %v2954_v48, 0.0 }
 0x399   : > { %v894_v25 = vpop.xlane.xlu1 %893 }
 0x39a   : > { %2276 = vrcp.f32 %v894_v25  ;;  %vm904_vm5 = vcmp.gt.f32.partialorder %v894_v25, 0.0 }
 0x39b   : > { %2278 = vrcp.f32 %v1090_v23  ;;  %v2275_v26 = vpop.eup %2274 }
 0x39c   : > { %v913_v47 = vsel %vm905_vm4, %v2275_v26, 0.0 }
 0x39d   : > { %v1087_v55 = vpop.xlane.xlu1 %1086  ;;  %v917_v30 = vmul.f32 %v913_v47, %v2845_v33 }
 0x39e   : > { %2280 = vrcp.f32 %v1087_v55  ;;  %vm1097_vm15 = vcmp.gt.f32.partialorder %v1087_v55, 0.0 }
 0x3a7   : > { %v2277_v29 = vpop.eup %2276 }
 0x3a8   : > { %v912_v34 = vsel %vm904_vm5, %v2277_v29, 0.0  ;;  %v2279_v43 = vpop.eup %2278  ;;  %vm1724_vm5 = vcmask 261120  }
 0x3a9   : > { %v916_v51 = vmul.f32 %v912_v34, %v2866_v61  ;;  %v1106_v58 = vsel %vm1098_vm14, %v2279_v43, 0.0  ;;  %vm1733_vm14 = vcmask 785408  }
 0x3aa   : > { %v1110_v28 = vmul.f32 %v1106_v58, %v2838_v49 }
 0x3ab   : > { %2104 = vmatprep.mubr.msk.f32.mxu0 %vm863_vm8, %v916_v51  ;;  %v2281_v53 = vpop.eup %2280 }
 0x3ac   : > { %2105 = vmatmul.mubr.msk.f32.vlgmr.msra.gmra.mxu0 %vm863_vm8, %v917_v30  ;;  %v1105_v35 = vsel %vm1097_vm15, %v2281_v53, 0.0 }
 0x3ad   : > { %2133 = vmatpush3.msra.mxu0 %v2616_v2  ;;  %v1109_v0 = vmul.f32 %v1105_v35, %v2872_v8  ;;  %v1312_v2 = vpop.xlane.xlu0 %1311 }
 0x3ae   : > { %2134 = vmatprep.subr.mxu0 %v2630_v20  ;;  %vm1322_vm1 = vcmp.gt.f32.partialorder %v1312_v2, 0.0 }
 0x3af   : > { %2135 = vmatpush3.msra.mxu0 %v2630_v20  ;;  %2126 = vmatprep.mubr.msk.f32.mxu1 %vm863_vm8, %v1109_v0 }
 0x3b0   : > { %2136 = vmatprep.subr.mxu0 %v2833_v24  ;;  %2127 = vmatmul.mubr.msk.f32.vlgmr.msra.gmra.mxu1 %vm863_vm8, %v1110_v28 }
 0x3b1   : > { %2137 = vmatpush3.msra.mxu0 %v2833_v24  ;;  %2155 = vmatpush3.msra.mxu1 %v2619_v5  ;;  %v1529_v5 = vpop.xlane.xlu0 %1528 }
 0x3b2   : > { %2138 = vmatprep.subr.mxu0 %v1347_v6  ;;  %2156 = vmatprep.subr.mxu1 %v2633_v22  ;;  %vm1539_vm7 = vcmp.gt.f32.partialorder %v1529_v5, 0.0 }
 0x3b3   : > { %2139 = vmatpush3.msra.mxu0 %v1347_v6  ;;  %2157 = vmatpush3.msra.mxu1 %v2633_v22 }
 0x3b4   : > { %2140 = vmatprep.subr.mxu0 %v1345_v9  ;;  %2158 = vmatprep.subr.mxu1 %v2826_v3 }
 0x3b5   : > { %2141 = vmatpush3.msra.mxu0 %v1345_v9  ;;  %2159 = vmatpush3.msra.mxu1 %v2826_v3  ;;  %v903_v22 = vpop.xlane.xlu0 %902 }
 0x3b6   : > { %2142 = vmatprep.subr.mxu0 %v1343_v14  ;;  %2160 = vmatprep.subr.mxu1 %v2900_v19  ;;  %2282 = vrcp.f32 %v903_v22  ;;  %vm907_vm0 = vcmp.gt.f32.partialorder %v903_v22, 0.0 }
 0x3b7   : > { %2143 = vmatpush3.msra.mxu0 %v1343_v14  ;;  %2161 = vmatpush3.msra.mxu1 %v2900_v19  ;;  %2284 = vrcp.f32 %v1312_v2 }
 0x3b8   : > { %2144 = vmatprep.subr.mxu0 %v1341_v59  ;;  %2162 = vmatprep.subr.mxu1 %v2902_v21  ;;  %2286 = vrcp.f32 %v2952_v16 }
 0x3b9   : > { %2145 = vmatpush3.msra.mxu0 %v1341_v59  ;;  %2163 = vmatpush3.msra.mxu1 %v2902_v21  ;;  %v1096_v24 = vpop.xlane.xlu0 %1095 }
 0x3ba   : > { %2164 = vmatprep.subr.mxu1 %v2904_v18  ;;  %vm1100_vm6 = vcmp.gt.f32.partialorder %v1096_v24, 0.0 }
 0x3bb   : > { %2165 = vmatpush3.msra.mxu1 %v2904_v18 }
 0x3bc   : > { %2166 = vmatprep.subr.mxu1 %v1558_v12 }
 0x3bd   : > { %2167 = vmatpush3.msra.mxu1 %v1558_v12 }
 0x3c3   : > { %v2283_v19 = vpop.eup %2282 }
 0x3c4   : > { %v2285_v21 = vpop.eup %2284  ;;  %v915_v40 = vsel %vm907_vm0, %v2283_v19, 0.0 }
 0x3c5   : > { %v2287_v38 = vpop.eup %2286  ;;  %v1330_v27 = vsel %vm1322_vm1, %v2285_v21, 0.0  ;;  %v919_v41 = vmul.f32 %v915_v40, %v2890_v15 }
 0x3c6   : > { %v1331_v17 = vsel %vm1323_vm3, %v2287_v38, 0.0  ;;  %v1334_v63 = vmul.f32 %v1330_v27, %v2876_v4 }
 0x3c7   : > { %v1335_v15 = vmul.f32 %v1331_v17, %v2853_v36 }
 0x3e2   : > { %v2980_v20 = vpop.xlane.xlu1 %1320 }
 0x3e3   : > { %vm1325_vm11 = vcmp.gt.f32.partialorder %v2980_v20, 0.0 }
 0x3e6   : > { %v2982_v3 = vpop.xlane.xlu1 %1537 }
 0x3e7   : > { %vm1542_vm13 = vcmp.gt.f32.partialorder %v2982_v3, 0.0 }
 0x3ea   : > { %v900_v49 = vpop.xlane.xlu1 %899 }
 0x3eb   : > { %2288 = vrcp.f32 %v900_v49  ;;  %vm906_vm2 = vcmp.gt.f32.partialorder %v900_v49, 0.0 }
 0x3ec   : > { %2290 = vrcp.f32 %v1096_v24 }
 0x3ed   : > { %2292 = vrcp.f32 %v1529_v5 }
 0x3ee   : > { %2294 = vrcp.f32 %v2954_v48  ;;  %v1093_v33 = vpop.xlane.xlu1 %1092 }
 0x3ef   : > { %2296 = vrcp.f32 %v1093_v33  ;;  %vm1099_vm9 = vcmp.gt.f32.partialorder %v1093_v33, 0.0 }
 0x3f0   : > { %2298 = vrcp.f32 %v2980_v20 }
 0x3f2   : > { %v1318_v61 = vpop.xlane.xlu0 %1317  ;;  %v1556_v8 = vpop.permute.xlu1 %1555 }
 0x3f3   : > { %2300 = vrcp.f32 %v1318_v61  ;;  %2168 = vmatprep.subr.mxu1 %v1556_v8  ;;  %vm1324_vm12 = vcmp.gt.f32.partialorder %v1318_v61, 0.0 }
 0x3f4   : > { %2302 = vrcp.f32 %v2982_v3  ;;  %2169 = vmatpush3.msra.mxu1 %v1556_v8 }
 0x3f6   : > { %v1535_v18 = vpop.xlane.xlu0 %1534 }
 0x3f7   : > { %2304 = vrcp.f32 %v1535_v18  ;;  %vm1541_vm4 = vcmp.gt.f32.partialorder %v1535_v18, 0.0 }
 0x3f8   : > { %v2289_v60 = vpop.eup %2288 }
 0x3f9   : > { %v2291_v50 = vpop.eup %2290  ;;  %v914_v62 = vsel %vm906_vm2, %v2289_v60, 0.0 }
 0x3fa   : > { %v2293_v45 = vpop.eup %2292  ;;  %v918_v44 = vmul.f32 %v914_v62, %v2926_v54  ;;  %v1339_v52 = vpop.permute.xlu0 %1338  ;;  %v1108_v11 = vsel %vm1100_vm6, %v2291_v50, 0.0 }
 0x3fb   : > { %v2295_v42 = vpop.eup %2294  ;;  %2146 = vmatprep.subr.mxu0 %v1339_v52  ;;  %v1547_v6 = vsel %vm1539_vm7, %v2293_v45, 0.0  ;;  %v1112_v4 = vmul.f32 %v1108_v11, %v2896_v46 }
 0x3fc   : > { %v2297_v57 = vpop.eup %2296  ;;  %2107 = vmatprep.mubr.msk.f32.mxu0 %vm863_vm8, %v918_v44  ;;  %2147 = vmatpush3.msra.mxu0 %v1339_v52  ;;  %v1548_v13 = vsel %vm1540_vm10, %v2295_v42, 0.0  ;;  %v1551_v14 = vmul.f32 %v1547_v6, %v2884_v10 }
 0x3fd   : > { %v2299_v37 = vpop.eup %2298  ;;  %v1107_v9 = vsel %vm1099_vm9, %v2297_v57, 0.0  ;;  %2108 = vmatmul.mubr.msk.f32.gmra.mxu0 %vm863_vm8, %v919_v41  ;;  %v1552_v46 = vmul.f32 %v1548_v13, %v2860_v56 }
 0x3fe   : > { %v1111_v54 = vmul.f32 %v1107_v9, %v2932_v7  ;;  %2148 = vmatprep.mubr.msk.f32.mxu0 %vm863_vm8, %v1334_v63  ;;  %v1333_v16 = vsel %vm1325_vm11, %v2299_v37, 0.0 }
 0x3ff   : > { %v1337_v48 = vmul.f32 %v1333_v16, %v2913_v39 }
 0x400   : > { %v2301_v12 = vpop.eup %2300  ;;  %2129 = vmatprep.mubr.msk.f32.mxu1 %vm863_vm8, %v1111_v54 }
 0x401   : > { %v2303_v59 = vpop.eup %2302  ;;  %v1332_v7 = vsel %vm1324_vm12, %v2301_v12, 0.0  ;;  %2130 = vmatmul.mubr.msk.f32.gmra.mxu1 %vm863_vm8, %v1112_v4  ;;  %2149 = vmatmul.mubr.msk.f32.vlgmr.msra.gmra.mxu0 %vm863_vm8, %v1335_v15 }
 0x402   : > { %v1336_v36 = vmul.f32 %v1332_v7, %v2938_v32  ;;  %2170 = vmatprep.mubr.msk.f32.mxu1 %vm863_vm8, %v1551_v14  ;;  %v1550_v23 = vsel %vm1542_vm13, %v2303_v59, 0.0 }
 0x403   : > { %v1554_v55 = vmul.f32 %v1550_v23, %v2920_v31 }
 0x404   : > { %v2305_v10 = vpop.eup %2304  ;;  %2151 = vmatprep.mubr.msk.f32.mxu0 %vm863_vm8, %v1336_v36 }
 0x405   : > { %v1549_v25 = vsel %vm1541_vm4, %v2305_v10, 0.0  ;;  %2152 = vmatmul.mubr.msk.f32.gmra.mxu0 %vm863_vm8, %v1337_v48  ;;  %2171 = vmatmul.mubr.msk.f32.vlgmr.msra.gmra.mxu1 %vm863_vm8, %v1552_v46 }
 0x406   : > { %v1553_v32 = vmul.f32 %v1549_v25, %v2944_v1 }
 0x408   : > { %2173 = vmatprep.mubr.msk.f32.mxu1 %vm863_vm8, %v1553_v32 }
 0x409   : > { %2174 = vmatmul.mubr.msk.f32.gmra.mxu1 %vm863_vm8, %v1554_v55 }
 0x46c   : > { %v2106_v26 = vpop.f32.mrf.mxu0 }
 0x46e   : > { %v998_v29 = vpop.f32.mrf.mxu0 }
 0x470   : > { %v2128_v56 = vpop.f32.mrf.mxu1 }
 0x471   : > { %1682 = vrot.lane.b32.xlu1 %v2128_v56, %s2371_s23 }
 0x472   : > { %v1223_v39 = vpop.f32.mrf.mxu1 }
 0x473   : > { %1680 = vrot.lane.b32.xlu0 %v1223_v39, %s2371_s23 }
 0x4bd   : > { %v2109_v47 = vpop.f32.mrf.mxu0 }
 0x4bf   : > { %v1008_v34 = vpop.f32.mrf.mxu0 }
 0x4c1   : > { %v2131_v43 = vpop.f32.mrf.mxu1  ;;  %v2150_v1 = vpop.f32.mrf.mxu0 }
 0x4c2   : > { %1686 = vrot.lane.b32.xlu1 %v2131_v43, %s2371_s23 }
 0x4c3   : > { %v1233_v51 = vpop.f32.mrf.mxu1  ;;  %v1440_v31 = vpop.f32.mrf.mxu0 }
 0x4c4   : > { %1684 = vrot.lane.b32.xlu0 %v1233_v51, %s2371_s23 }
 0x4c5   : > { %v2172_v30 = vpop.f32.mrf.mxu1  ;;  %v2153_v53 = vpop.f32.mrf.mxu0 }
 0x4c6   : > { %1698 = vrot.lane.b32.xlu1 %v2150_v1, %s2370_s17 }
 0x4c7   : > { %v1657_v58 = vpop.f32.mrf.mxu1  ;;  %v1450_v35 = vpop.f32.mrf.mxu0 }
 0x4c8   : > { %1696 = vrot.lane.b32.xlu0 %v1440_v31, %s2370_s17 }
 0x4c9   : > { %v2175_v0 = vpop.f32.mrf.mxu1 }
 0x4ca   : > { %1714 = vrot.lane.b32.xlu1 %v2172_v30, %s2369_s30 }
 0x4cb   : > { %v1667_v28 = vpop.f32.mrf.mxu1 }
 0x4cc   : > { %1712 = vrot.lane.b32.xlu0 %v1657_v58, %s2369_s30 }
 0x4ce   : > { %1702 = vrot.lane.b32.xlu1 %v2153_v53, %s2370_s17 }
 0x4d0   : > { %1700 = vrot.lane.b32.xlu0 %v1450_v35, %s2370_s17  ;;  %s2376_s17 = smov [#allocation2]  }
 0x4d1   : > { %s2310_s23 = sshll.u32 %s2376_s17, 4  ;;  %s2311_s23 = int_to_ptr.vmem [resolvable:$false] %s2310_s23 }
 0x4d2   : > { %1718 = vrot.lane.b32.xlu1 %v2175_v0, %s2369_s30  ;;  %s2312_s25 = scalar_lea.vmem %s2311_s23, 1024  ;;  %p2313_p1 = scmp.lt.s32.totalorder %s3041_s13, %s2311_s23 }
 0x4d4   : > { %1716 = vrot.lane.b32.xlu0 %v1667_v28, %s2369_s30  ;;  %s2306_s30 = scalar_lea.vmem %s3041_s13, 512 }
 0x4d5   : > { %p2307_p12 = scmp.ne.s32.totalorder %s3041_s13, %s2306_s30  ;;  %p2314_p2 = scmp.lt.s32.totalorder %s2312_s25, %s2306_s30 }
 0x4d7   : > { %p2308_p13 = pnand %p2307_p12, %p2447_p5  ;;  %p2315_p3 = por %p2314_p2, %p2313_p1 }
 0x4d9   : > { %p2309_p0 = pneg %p2308_p13 }
 0x4db   : > { %p2316_p4 = pnand %p2315_p3, %p2309_p0 }
 0x4e3   : > { %v1683_v2 = vpop.permute.xlu1 %1682 }
 0x4e4   : > { %v1726_v49 = vsel %vm1724_vm5, %v2106_v26, %v1683_v2 }
 0x4e5   : > { %v1681_v5 = vpop.permute.xlu0 %1680 }
 0x4e6   : > { %v1725_v8 = vsel %vm1724_vm5, %v998_v29, %v1681_v5 }
 0x534   : > { %v1687_v20 = vpop.permute.xlu1 %1686 }
 0x535   : > { %v1728_v50 = vsel %vm1724_vm5, %v2109_v47, %v1687_v20 }
 0x536   : > { %v1685_v22 = vpop.permute.xlu0 %1684 }
 0x537   : > { %v1727_v45 = vsel %vm1724_vm5, %v1008_v34, %v1685_v22 }
 0x538   : > { %v1699_v3 = vpop.permute.xlu1 %1698 }
 0x539   : > { %v1730_v33 = vsel %vm863_vm8, %v1726_v49, %v1699_v3 }
 0x53a   : > { %v1697_v24 = vpop.permute.xlu0 %1696 }
 0x53b   : > { %v1729_v21 = vsel %vm863_vm8, %v1725_v8, %v1697_v24 }
 0x53c   : > { %v1715_v61 = vpop.permute.xlu1 %1714 }
 0x53d   : > { %v1735_v19 = vsel %vm1733_vm14, %v1730_v33, %v1715_v61 }
 0x53e   : > { %1739 = vst [vmem:[%s231_s12 + $0x8] sm:$0xff] %v1735_v19  ;;  %v1713_v18 = vpop.permute.xlu0 %1712 }
 0x53f   : > { %v1734_v38 = vsel %vm1733_vm14, %v1729_v21, %v1713_v18 }
 0x540   : > { %1738 = vst [vmem:[%s231_s12] sm:$0xff] %v1734_v38  ;;  %v1703_v60 = vpop.permute.xlu1 %1702 }
 0x541   : > { %v1732_v27 = vsel %vm863_vm8, %v1728_v50, %v1703_v60 }
 0x542   : > { %v1701_v40 = vpop.permute.xlu0 %1700 }
 0x543   : > { %v1731_v52 = vsel %vm863_vm8, %v1727_v45, %v1701_v40 }
 0x544   : > { %v1719_v62 = vpop.permute.xlu1 %1718 }
 0x545   : > { %v1737_v44 = vsel %vm1733_vm14, %v1732_v27, %v1719_v62 }
 0x546   : > { %1741 = vst [vmem:[%s231_s12 + $0x18] sm:$0xff] %v1737_v44  ;;  %v1717_v42 = vpop.permute.xlu0 %1716 }
 0x547   : > { %v1736_v17 = vsel %vm1733_vm14, %v1731_v52, %v1717_v42 }
 0x548   : > { %1740 = vst [vmem:[%s231_s12 + $0x10] sm:$0xff] %v1736_v17 }
 0x549   : > { %2319 = shalt.err (!%p2316_p4)
}
 0x54a   : > { %s2320_s26 = scalar_lea.hbm %s3048_s22, 512  ;;  %s2324_s10 = scalar_lea.hbm %s3098_s5, 1024 }
 0x54b   : > { %p2321_p7 = scmp.ne.s32.totalorder %s3048_s22, %s2320_s26  ;;  %p2325_p10 = scmp.lt.s32.totalorder %s3048_s22, %s3098_s5 }
 0x54c   : > { %p2326_p11 = scmp.lt.s32.totalorder %s2324_s10, %s2320_s26 }
 0x54d   : > { %p2322_p8 = pnand %p2321_p7, %p2447_p5 }
 0x54e   : > { %p2327_p12 = por %p2326_p11, %p2325_p10 }
 0x54f   : > { %p2323_p9 = pneg %p2322_p8 }
 0x551   : > { %p2328_p13 = pnand %p2327_p12, %p2323_p9 }
 0x553   : > { %2331 = shalt.err (!%p2328_p13)
}
 0x554   : > { %s2377_s12 = smov 128   ;;  %s2378_s9 = smov 8  }
 0x555   : > { %2176 = dma.vmem_to_hbm [thread:$0]  (%p2447_p5), %s3041_s13, 512, %s3048_s22, %s3053_s16, %s2377_s12, %s2377_s12, %s2378_s9  }
 0x556 PF: > { %p2182_p0 = scmp.ge.s32.totalorder %s2366_s21, 2  ;;  %s1771_s14 = sand.u32 1, %s2354_s18  }
 0x557   : > { %s1772_s15 = scalar_lea.sflag [#allocation3], %s1771_s14 }
 0x558   : > { %p2179_p1 = pnand %p2182_p0, %p2451_p6 }
 0x55a   : > { %p2180_p2 = pneg %p2179_p1 }
 0x55c   : > { %2349 = dma.done.wait (%p2180_p2), %s1772_s15, 512  }
 0x55d   : > { %2351 = vsyncadd (%p2180_p2), %s1772_s15, 4294966784  ;;  %p15_p3 = scmp.ge.s32.totalorder %s2434_s24, 4   ;;  %s3109_s18 = smov %s2358_s19 }
 0x55e   : > { %s3110_s19 = smov %s2362_s20  ;;  %s3111_s20 = smov %s2445_s27 }
 0x55f   : > { %s3112_s21 = smov %s2434_s24  ;;  %17 = sbr.rel (!%p15_p3) target bundleno = 3 (0x3), region = 78 }
 0x564   :  { %1777 = vsyncpa [#allocation3], 1 }
 0x565   :  { %1779 = vsyncpa [#allocation3 + $0x1], 1 }

</bundles_post_ra>
